<compile_context>
chip_gen: v5e
topology: v5e:2x2
jax: 0.10.0
libtpu: 0.0.40
codegen_flags: <defaults>
</compile_context>

<pallas_src>
import functools

import jax
import jax.numpy as jnp
from jax import lax
from jax.experimental import pallas as pl
from jax.experimental.pallas import tpu as pltpu


def _linear_attention_kernel(x_ref, gamma_ref, wqk_ref, wv_ref, qts_ref,
                             bias_ref, wo_ref, o_ref,
                             gram_sc, qss_sc, kss_sc, *,
                             dim_inner, matmul_dtype, eps=1e-12):
    p = pl.program_id(1)   # 0: accumulate Gram / norms, 1: apply attn + project
    t = pl.program_id(2)   # sequence tile

    # ---- RMSNorm (f32), recomputed per pass (cheap VPU work) ---------------
    x = x_ref[0].astype(jnp.float32)                       # (Tn, dim)
    ssq = jnp.sum(x * x, axis=-1, keepdims=True)
    inv_norm = 1.0 / jnp.maximum(jnp.sqrt(ssq), eps)       # (Tn, 1)
    xn = (x * inv_norm) * gamma_ref[...]                   # gamma pre-scaled by sqrt(dim)
    xn_m = xn.astype(matmul_dtype)

    @pl.when(jnp.logical_and(p == 0, t == 0))
    def _init():
        gram_sc[...] = jnp.zeros_like(gram_sc)
        qss_sc[...] = jnp.zeros_like(qss_sc)
        kss_sc[...] = jnp.zeros_like(kss_sc)

    @pl.when(p == 0)
    def _pass0():
        qk = jnp.dot(xn_m, wqk_ref[...],
                     preferred_element_type=jnp.float32)   # (Tn, 2*h*d)
        qf = qk[:, :dim_inner]
        kf = qk[:, dim_inner:]
        # sum-of-squares over the sequence axis (for the deferred l2 norm)
        qss_sc[...] += jnp.sum(qf * qf, axis=0, keepdims=True)
        kss_sc[...] += jnp.sum(kf * kf, axis=0, keepdims=True)
        # raw head-major Gram, contracted over the sequence axis
        gram_sc[...] += lax.dot_general(
            qf.astype(matmul_dtype), kf.astype(matmul_dtype),
            (((0,), (0,)), ((), ())), preferred_element_type=jnp.float32)

    @pl.when(jnp.logical_and(p == 1, t == 0))
    def _softmax():
        # Deferred q/k l2-normalization + exp(temperature) + scale: a diagonal
        # rescale of the bilinear form (identical math).  Everything here is
        # O((h*d)^2), so exact divides are used (no VALU pressure to relieve).
        inv_q = 1.0 / jnp.maximum(jnp.sqrt(qss_sc[...]), eps)    # (1, h*d)
        inv_k = 1.0 / jnp.maximum(jnp.sqrt(kss_sc[...]), eps)    # (1, h*d)
        row_scale = jnp.transpose(qts_ref[...] * inv_q)          # (h*d, 1)
        sim = gram_sc[...] * row_scale * inv_k + bias_ref[...]   # block-diag bias
        sim = sim - jnp.max(sim, axis=-1, keepdims=True)
        pexp = jnp.exp(sim)                                      # masked -> exactly 0
        gram_sc[...] = pexp / jnp.sum(pexp, axis=-1, keepdims=True)  # attn in place

    @pl.when(p == 1)
    def _pass1():
        vf = jnp.dot(xn_m, wv_ref[...],
                     preferred_element_type=jnp.float32)         # (Tn, h*d)
        attn_m = gram_sc[...].astype(matmul_dtype)               # block-diagonal
        # out[b,h,i,n] = sum_j attn[h,i,j] v[b,h,j,n]  ->  flat: vf @ attn^T
        out_flat = lax.dot_general(
            vf.astype(matmul_dtype), attn_m,
            (((1,), (1,)), ((), ())), preferred_element_type=jnp.float32)
        out = jnp.dot(out_flat.astype(matmul_dtype), wo_ref[...],
                      preferred_element_type=jnp.float32)        # (Tn, dim)
        o_ref[0] = out.astype(o_ref.dtype)


def _pick_seq_tile(n, target=512):
    """Largest divisor of n <= target that is a multiple of 8 (else n)."""
    if n <= target:
        return n
    for cand in range(target, 127, -1):
        if n % cand == 0 and cand % 8 == 0:
            return cand
    # TODO(synk): pad/mask ragged sequence lengths instead of one giant tile.
    return n


def _vmem_limit_bytes():
    # Generation-aware scoped-VMEM limit: ~3/4 of physical capacity
    # (v5e/v6e: 128 MiB -> 96 MiB, v7x: 64 MiB -> 48 MiB).
    try:
        cap = pltpu.get_tpu_info().vmem_capacity_bytes
    except Exception:
        cap = 64 * 1024 * 1024
    return int(cap * 3 // 4)


def linear_attention(x, gamma, w_qkv, temperature, w_out, *, heads, dim_head,
                     scale=8.0, matmul_dtype=jnp.bfloat16, out_dtype=None,
                     seq_tile=None):
    """LinearAttention forward.

    Args:
      x:           (b, n, dim) activations (f32 or bf16; dtype is preserved on I/O).
      gamma:       (dim,) RMSNorm weight.
      w_qkv:       (3*heads*dim_head, dim) to_qkv Linear weight (PyTorch layout,
                   fused output ordered (qkv, head, dim_head)).
      temperature: (heads, 1, 1) learned per-head temperature.
      w_out:       (dim, heads*dim_head) to_out Linear weight (PyTorch layout).
      matmul_dtype: dtype of MXU operands (accumulation is always f32).
    """
    b, n, dim = x.shape
    dim_inner = heads * dim_head
    assert w_qkv.shape == (3 * dim_inner, dim)
    assert w_out.shape == (dim, dim_inner)
    out_dtype = x.dtype if out_dtype is None else out_dtype

    tn = _pick_seq_tile(n) if seq_tile is None else seq_tile
    assert n % tn == 0, (n, tn)
    n_tiles = n // tn

    # ---- host-side precomputation hoisted out of the kernel -----------------
    gamma2d = (gamma.astype(jnp.float32) * (dim ** 0.5)).reshape(1, dim)
    wqk_t = w_qkv[:2 * dim_inner].T.astype(matmul_dtype)      # (dim, 2*h*d)
    wv_t = w_qkv[2 * dim_inner:].T.astype(matmul_dtype)       # (dim, h*d)
    wo_t = w_out.T.astype(matmul_dtype)                       # (h*d, dim)
    # scale * exp(temperature), repeated per dim_head (head-major columns)
    qts = (float(scale) * jnp.repeat(
        jnp.exp(temperature.astype(jnp.float32)).reshape(heads),
        dim_head)).reshape(1, dim_inner)
    # block-diagonal additive bias: 0 inside a head's (d x d) block, -1e30 outside
    head_id = jnp.arange(dim_inner, dtype=jnp.int32) // dim_head
    bias = jnp.where(head_id[:, None] == head_id[None, :],
                     0.0, -1e30).astype(jnp.float32)

    kernel = functools.partial(_linear_attention_kernel, dim_inner=dim_inner,
                               matmul_dtype=matmul_dtype)

    cost = pl.CostEstimate(
        flops=2 * b * n * (4 * dim * dim_inner + 2 * dim_inner * dim_inner),
        transcendentals=b * (dim_inner * dim_inner + 2 * n),
        bytes_accessed=(2 * b * n * dim * x.dtype.itemsize            # x read twice
                        + b * n * dim * jnp.dtype(out_dtype).itemsize
                        + int(wqk_t.size + wv_t.size + wo_t.size)
                        * jnp.dtype(matmul_dtype).itemsize
                        + int(gamma2d.size + qts.size + bias.size) * 4))

    x_spec = pl.BlockSpec((1, tn, dim), lambda bi, p, t: (bi, t, 0))
    # Pass 0 parks the output window on block (bi, 0) and never writes it, so
    # nothing is flushed to HBM until pass 1 has fully rewritten each block.
    o_spec = pl.BlockSpec((1, tn, dim), lambda bi, p, t: (bi, t * p, 0))

    def make_call(single_buffer_consts):
        def const_spec(shape):
            if single_buffer_consts:
                return pl.BlockSpec(shape, lambda bi, p, t: (0, 0),
                                    pipeline_mode=pl.Buffered(1))
            return pl.BlockSpec(shape, lambda bi, p, t: (0, 0))

        return pl.pallas_call(
            kernel,
            out_shape=jax.ShapeDtypeStruct((b, n, dim), out_dtype),
            grid=(b, 2, n_tiles),
            in_specs=[
                x_spec,
                const_spec((1, dim)),                # sqrt(dim) * gamma
                const_spec((dim, 2 * dim_inner)),    # W_qk^T
                const_spec((dim, dim_inner)),        # W_v^T
                const_spec((1, dim_inner)),          # scale * exp(temperature)
                const_spec((dim_inner, dim_inner)),  # block-diag additive bias
                const_spec((dim_inner, dim)),        # W_out^T
            ],
            out_specs=o_spec,
            scratch_shapes=[
                pltpu.VMEM((dim_inner, dim_inner), jnp.float32),  # Gram -> attn
                pltpu.VMEM((1, dim_inner), jnp.float32),          # sum q^2 over n
                pltpu.VMEM((1, dim_inner), jnp.float32),          # sum k^2 over n
            ],
            compiler_params=pltpu.CompilerParams(
                dimension_semantics=("parallel", "arbitrary", "arbitrary"),
                vmem_limit_bytes=_vmem_limit_bytes(),
            ),
            cost_estimate=cost,
        )

    args = (x, gamma2d, wqk_t, wv_t, qts, bias, wo_t)
    if hasattr(pl, "Buffered"):
        try:
            return make_call(True)(*args)
        except Exception:
            pass  # older jax: pipeline_mode not plumbed through pallas_call
    return make_call(False)(*args)


def linear_attention_ref(x, gamma, w_qkv, temperature, w_out, *, heads,
                         dim_head, scale=8.0, eps=1e-12):
    """Pure-JAX reference mirroring the PyTorch module."""
    b, n, dim = x.shape
    dim_inner = heads * dim_head
    xn = x / jnp.maximum(jnp.linalg.norm(x, axis=-1, keepdims=True), eps)
    xn = xn * (dim ** 0.5) * gamma
    qkv = xn @ w_qkv.T                                                    # (b,n,3*h*d)
    qkv = qkv.reshape(b, n, 3, heads, dim_head).transpose(2, 0, 3, 4, 1)  # qkv b h d n
    q, k, v = qkv[0], qkv[1], qkv[2]
    l2 = lambda t: t / jnp.maximum(jnp.linalg.norm(t, axis=-1, keepdims=True), eps)
    q, k = l2(q), l2(k)
    q = q * jnp.exp(temperature)[None]                                    # (1,h,1,1)
    sim = jnp.einsum('bhin,bhjn->bhij', q, k) * scale
    attn = jax.nn.softmax(sim, axis=-1)
    out = jnp.einsum('bhij,bhjn->bhin', attn, v)                          # b h d n
    out = out.transpose(0, 3, 1, 2).reshape(b, n, dim_inner)              # b n (h d)
    return out @ w_out.T


if __name__ == "__main__":
    # small shapes consistent with the module
    b, n, dim = 2, 16, 32
    heads, dim_head, scale = 4, 8, 8.0
    dim_inner = heads * dim_head

    key = jax.random.PRNGKey(0)
    kx, kqkv, ko, kt = jax.random.split(key, 4)

    x = jax.random.normal(kx, (b, n, dim), dtype=jnp.float32)

    bound_qkv = 1.0 / (dim ** 0.5)
    bound_out = 1.0 / (dim_inner ** 0.5)
    w_qkv = jax.random.uniform(kqkv, (3 * dim_inner, dim), jnp.float32,
                               -bound_qkv, bound_qkv)
    w_out = jax.random.uniform(ko, (dim, dim_inner), jnp.float32,
                               -bound_out, bound_out)
    gamma = jnp.ones((dim,), jnp.float32)                         # RMSNorm.gamma
    temperature = 1.0 + 0.1 * jax.random.normal(kt, (heads, 1, 1), jnp.float32)

    with jax.default_matmul_precision("highest"):
        ref = linear_attention_ref(x, gamma, w_qkv, temperature, w_out,
                                   heads=heads, dim_head=dim_head, scale=scale)
    ref = jax.block_until_ready(ref)

    # 1) semantics check with f32 matmul operands
    out_f32 = jax.block_until_ready(
        linear_attention(x, gamma, w_qkv, temperature, w_out, heads=heads,
                         dim_head=dim_head, scale=scale,
                         matmul_dtype=jnp.float32))
    assert out_f32.shape == (b, n, dim) and out_f32.dtype == jnp.float32
    max_err = jnp.max(jnp.abs(out_f32 - ref))
    assert jnp.allclose(out_f32, ref, atol=5e-3, rtol=5e-3), \
        f"f32 max err {max_err}"

    # 2) performance configuration: bf16 MXU operands, f32 accumulation
    out_bf16 = jax.block_until_ready(
        linear_attention(x, gamma, w_qkv, temperature, w_out, heads=heads,
                         dim_head=dim_head, scale=scale,
                         matmul_dtype=jnp.bfloat16))
    rel = jnp.linalg.norm(out_bf16 - ref) / jnp.linalg.norm(ref)
    assert rel < 8e-2, f"bf16 relative error {rel}"

    print("KERNEL_OK")
</pallas_src>

<mosaic_0001>
module attributes {stable_mosaic.version = 11 : i64} {
  func.func @_linear_attention_kernel(%arg0: i32, %arg1: i32, %arg2: i32, %arg3: memref<1x16x32xf32, #tpu.memory_space<vmem>>, %arg4: memref<1x32xf32, #tpu.memory_space<vmem>>, %arg5: memref<32x64xf32, #tpu.memory_space<vmem>>, %arg6: memref<32x32xf32, #tpu.memory_space<vmem>>, %arg7: memref<1x32xf32, #tpu.memory_space<vmem>>, %arg8: memref<32x32xf32, #tpu.memory_space<vmem>>, %arg9: memref<32x32xf32, #tpu.memory_space<vmem>>, %arg10: memref<1x16x32xf32, #tpu.memory_space<vmem>>, %arg11: memref<32x32xf32, #tpu.memory_space<vmem>>, %arg12: memref<1x32xf32, #tpu.memory_space<vmem>>, %arg13: memref<1x32xf32, #tpu.memory_space<vmem>>) attributes {dimension_semantics = [#tpu.dimension_semantics<parallel>, #tpu.dimension_semantics<arbitrary>, #tpu.dimension_semantics<arbitrary>], iteration_bounds = array<i64: 2, 2, 1>, scalar_prefetch = 0 : i64, scratch_operands = 3 : i64, tpu.core_type = #tpu.core_type<tc>, window_params = [{transform_indices = @transform_0, window_bounds = array<i64: 1, 16, 32>}, {pipeline_mode = #tpu.pipeline_mode<synchronous>, transform_indices = @transform_1, window_bounds = array<i64: 1, 32>}, {pipeline_mode = #tpu.pipeline_mode<synchronous>, transform_indices = @transform_2, window_bounds = array<i64: 32, 64>}, {pipeline_mode = #tpu.pipeline_mode<synchronous>, transform_indices = @transform_3, window_bounds = array<i64: 32, 32>}, {pipeline_mode = #tpu.pipeline_mode<synchronous>, transform_indices = @transform_4, window_bounds = array<i64: 1, 32>}, {pipeline_mode = #tpu.pipeline_mode<synchronous>, transform_indices = @transform_5, window_bounds = array<i64: 32, 32>}, {pipeline_mode = #tpu.pipeline_mode<synchronous>, transform_indices = @transform_6, window_bounds = array<i64: 32, 32>}, {transform_indices = @transform_7, window_bounds = array<i64: 1, 16, 32>}]} {
    %c0 = arith.constant 0 : index
    %c0_0 = arith.constant 0 : index
    %c0_1 = arith.constant 0 : index
    %0 = vector.load %arg3[%c0, %c0_0, %c0_1] : memref<1x16x32xf32, #tpu.memory_space<vmem>>, vector<1x16x32xf32>
    %1 = vector.shape_cast %0 : vector<1x16x32xf32> to vector<16x32xf32>
    %2 = arith.mulf %1, %1 : vector<16x32xf32>
    %cst = arith.constant dense<0.000000e+00> : vector<16xf32>
    %3 = vector.multi_reduction <add>, %2, %cst [1] : vector<16x32xf32> to vector<16xf32>
    %4 = vector.shape_cast %3 : vector<16xf32> to vector<16x1xf32>
    %5 = math.sqrt %4 : vector<16x1xf32>
    %cst_2 = arith.constant 9.99999996E-13 : f32
    %6 = vector.broadcast %cst_2 : f32 to vector<16x1xf32>
    %7 = arith.maximumf %5, %6 : vector<16x1xf32>
    %cst_3 = arith.constant 1.000000e+00 : f32
    %8 = vector.broadcast %cst_3 : f32 to vector<16x1xf32>
    %9 = arith.divf %8, %7 : vector<16x1xf32>
    %10 = vector.broadcast %9 : vector<16x1xf32> to vector<16x32xf32>
    %11 = arith.mulf %1, %10 : vector<16x32xf32>
    %c0_4 = arith.constant 0 : index
    %c0_5 = arith.constant 0 : index
    %12 = vector.load %arg4[%c0_4, %c0_5] : memref<1x32xf32, #tpu.memory_space<vmem>>, vector<1x32xf32>
    %13 = vector.broadcast %12 : vector<1x32xf32> to vector<16x32xf32>
    %14 = arith.mulf %11, %13 : vector<16x32xf32>
    %c0_i32 = arith.constant 0 : i32
    %15 = arith.cmpi eq, %arg1, %c0_i32 : i32
    %c0_i32_6 = arith.constant 0 : i32
    %16 = arith.cmpi eq, %arg2, %c0_i32_6 : i32
    %17 = arith.andi %15, %16 : i1
    %18 = arith.extui %17 : i1 to i32
    %c0_i32_7 = arith.constant 0 : i32
    %19 = arith.cmpi ne, %18, %c0_i32_7 : i32
    scf.if %19 {
      %cst_14 = arith.constant 0.000000e+00 : f32
      %31 = vector.broadcast %cst_14 : f32 to vector<32x32xf32>
      %c0_15 = arith.constant 0 : index
      %c0_16 = arith.constant 0 : index
      %32 = vector.load %arg11[%c0_15, %c0_16] : memref<32x32xf32, #tpu.memory_space<vmem>>, vector<32x32xf32>
      tpu.vector_store %arg11[%c0_15, %c0_16], %31 {strides = array<i32>} : memref<32x32xf32, #tpu.memory_space<vmem>>, vector<32x32xf32>,
      %cst_17 = arith.constant 0.000000e+00 : f32
      %33 = vector.broadcast %cst_17 : f32 to vector<1x32xf32>
      %c0_18 = arith.constant 0 : index
      %c0_19 = arith.constant 0 : index
      %34 = vector.load %arg12[%c0_18, %c0_19] : memref<1x32xf32, #tpu.memory_space<vmem>>, vector<1x32xf32>
      tpu.vector_store %arg12[%c0_18, %c0_19], %33 {strides = array<i32>} : memref<1x32xf32, #tpu.memory_space<vmem>>, vector<1x32xf32>,
      %cst_20 = arith.constant 0.000000e+00 : f32
      %35 = vector.broadcast %cst_20 : f32 to vector<1x32xf32>
      %c0_21 = arith.constant 0 : index
      %c0_22 = arith.constant 0 : index
      %36 = vector.load %arg13[%c0_21, %c0_22] : memref<1x32xf32, #tpu.memory_space<vmem>>, vector<1x32xf32>
      tpu.vector_store %arg13[%c0_21, %c0_22], %35 {strides = array<i32>} : memref<1x32xf32, #tpu.memory_space<vmem>>, vector<1x32xf32>,
    } else {
    }
    %c0_i32_8 = arith.constant 0 : i32
    %20 = arith.cmpi eq, %arg1, %c0_i32_8 : i32
    %21 = arith.extui %20 : i1 to i32
    %c0_i32_9 = arith.constant 0 : i32
    %22 = arith.cmpi ne, %21, %c0_i32_9 : i32
    scf.if %22 {
      %c0_14 = arith.constant 0 : index
      %c0_15 = arith.constant 0 : index
      %31 = vector.load %arg5[%c0_14, %c0_15] : memref<32x64xf32, #tpu.memory_space<vmem>>, vector<32x64xf32>
      %cst_16 = arith.constant dense<0.000000e+00> : vector<16x64xf32>
      %32 = tpu.matmul %14, %31, %cst_16 {dimension_numbers = #tpu.dot_dimension_numbers<[1], [0], [0], [1], [0, 0, 1, 1], [], []>} : vector<16x32xf32>, vector<32x64xf32>, vector<16x64xf32> -> vector<16x64xf32>
      %33 = vector.extract_strided_slice %32 {offsets = [0, 0], sizes = [16, 32], strides = [1, 1]} : vector<16x64xf32> to vector<16x32xf32>
      %34 = vector.extract_strided_slice %32 {offsets = [0, 32], sizes = [16, 32], strides = [1, 1]} : vector<16x64xf32> to vector<16x32xf32>
      %c0_17 = arith.constant 0 : index
      %c0_18 = arith.constant 0 : index
      %35 = vector.load %arg12[%c0_17, %c0_18] : memref<1x32xf32, #tpu.memory_space<vmem>>, vector<1x32xf32>
      %36 = arith.mulf %33, %33 : vector<16x32xf32>
      %cst_19 = arith.constant dense<0.000000e+00> : vector<32xf32>
      %37 = vector.multi_reduction <add>, %36, %cst_19 [0] : vector<16x32xf32> to vector<32xf32>
      %38 = vector.shape_cast %37 : vector<32xf32> to vector<1x32xf32>
      %39 = arith.addf %35, %38 : vector<1x32xf32>
      %c0_20 = arith.constant 0 : index
      %c0_21 = arith.constant 0 : index
      %40 = vector.load %arg12[%c0_20, %c0_21] : memref<1x32xf32, #tpu.memory_space<vmem>>, vector<1x32xf32>
      tpu.vector_store %arg12[%c0_20, %c0_21], %39 {strides = array<i32>} : memref<1x32xf32, #tpu.memory_space<vmem>>, vector<1x32xf32>,
      %c0_22 = arith.constant 0 : index
      %c0_23 = arith.constant 0 : index
      %41 = vector.load %arg13[%c0_22, %c0_23] : memref<1x32xf32, #tpu.memory_space<vmem>>, vector<1x32xf32>
      %42 = arith.mulf %34, %34 : vector<16x32xf32>
      %cst_24 = arith.constant dense<0.000000e+00> : vector<32xf32>
      %43 = vector.multi_reduction <add>, %42, %cst_24 [0] : vector<16x32xf32> to vector<32xf32>
      %44 = vector.shape_cast %43 : vector<32xf32> to vector<1x32xf32>
      %45 = arith.addf %41, %44 : vector<1x32xf32>
      %c0_25 = arith.constant 0 : index
      %c0_26 = arith.constant 0 : index
      %46 = vector.load %arg13[%c0_25, %c0_26] : memref<1x32xf32, #tpu.memory_space<vmem>>, vector<1x32xf32>
      tpu.vector_store %arg13[%c0_25, %c0_26], %45 {strides = array<i32>} : memref<1x32xf32, #tpu.memory_space<vmem>>, vector<1x32xf32>,
      %c0_27 = arith.constant 0 : index
      %c0_28 = arith.constant 0 : index
      %47 = vector.load %arg11[%c0_27, %c0_28] : memref<32x32xf32, #tpu.memory_space<vmem>>, vector<32x32xf32>
      %cst_29 = arith.constant dense<0.000000e+00> : vector<32x32xf32>
      %48 = tpu.matmul %33, %34, %cst_29 {dimension_numbers = #tpu.dot_dimension_numbers<[0], [0], [1], [1], [0, 1, 1, 1], [], []>} : vector<16x32xf32>, vector<16x32xf32>, vector<32x32xf32> -> vector<32x32xf32>
      %49 = arith.addf %47, %48 : vector<32x32xf32>
      %c0_30 = arith.constant 0 : index
      %c0_31 = arith.constant 0 : index
      %50 = vector.load %arg11[%c0_30, %c0_31] : memref<32x32xf32, #tpu.memory_space<vmem>>, vector<32x32xf32>
      tpu.vector_store %arg11[%c0_30, %c0_31], %49 {strides = array<i32>} : memref<32x32xf32, #tpu.memory_space<vmem>>, vector<32x32xf32>,
    } else {
    }
    %c1_i32 = arith.constant 1 : i32
    %23 = arith.cmpi eq, %arg1, %c1_i32 : i32
    %c0_i32_10 = arith.constant 0 : i32
    %24 = arith.cmpi eq, %arg2, %c0_i32_10 : i32
    %25 = arith.andi %23, %24 : i1
    %26 = arith.extui %25 : i1 to i32
    %c0_i32_11 = arith.constant 0 : i32
    %27 = arith.cmpi ne, %26, %c0_i32_11 : i32
    scf.if %27 {
      %c0_14 = arith.constant 0 : index
      %c0_15 = arith.constant 0 : index
      %31 = vector.load %arg12[%c0_14, %c0_15] : memref<1x32xf32, #tpu.memory_space<vmem>>, vector<1x32xf32>
      %32 = math.sqrt %31 : vector<1x32xf32>
      %cst_16 = arith.constant 9.99999996E-13 : f32
      %33 = vector.broadcast %cst_16 : f32 to vector<1x32xf32>
      %34 = arith.maximumf %32, %33 : vector<1x32xf32>
      %cst_17 = arith.constant 1.000000e+00 : f32
      %35 = vector.broadcast %cst_17 : f32 to vector<1x32xf32>
      %36 = arith.divf %35, %34 : vector<1x32xf32>
      %c0_18 = arith.constant 0 : index
      %c0_19 = arith.constant 0 : index
      %37 = vector.load %arg13[%c0_18, %c0_19] : memref<1x32xf32, #tpu.memory_space<vmem>>, vector<1x32xf32>
      %38 = math.sqrt %37 : vector<1x32xf32>
      %cst_20 = arith.constant 9.99999996E-13 : f32
      %39 = vector.broadcast %cst_20 : f32 to vector<1x32xf32>
      %40 = arith.maximumf %38, %39 : vector<1x32xf32>
      %cst_21 = arith.constant 1.000000e+00 : f32
      %41 = vector.broadcast %cst_21 : f32 to vector<1x32xf32>
      %42 = arith.divf %41, %40 : vector<1x32xf32>
      %c0_22 = arith.constant 0 : index
      %c0_23 = arith.constant 0 : index
      %43 = vector.load %arg7[%c0_22, %c0_23] : memref<1x32xf32, #tpu.memory_space<vmem>>, vector<1x32xf32>
      %44 = arith.mulf %43, %36 : vector<1x32xf32>
      %45 = tpu.transpose %44, [1, 0] : vector<1x32xf32> -> vector<32x1xf32>
      %c0_24 = arith.constant 0 : index
      %c0_25 = arith.constant 0 : index
      %46 = vector.load %arg11[%c0_24, %c0_25] : memref<32x32xf32, #tpu.memory_space<vmem>>, vector<32x32xf32>
      %47 = vector.broadcast %45 : vector<32x1xf32> to vector<32x32xf32>
      %48 = arith.mulf %46, %47 : vector<32x32xf32>
      %49 = vector.broadcast %42 : vector<1x32xf32> to vector<32x32xf32>
      %50 = arith.mulf %48, %49 : vector<32x32xf32>
      %c0_26 = arith.constant 0 : index
      %c0_27 = arith.constant 0 : index
      %51 = vector.load %arg8[%c0_26, %c0_27] : memref<32x32xf32, #tpu.memory_space<vmem>>, vector<32x32xf32>
      %52 = arith.addf %50, %51 : vector<32x32xf32>
      %cst_28 = arith.constant dense<0xFF800000> : vector<32xf32>
      %53 = vector.multi_reduction <maximumf>, %52, %cst_28 [1] : vector<32x32xf32> to vector<32xf32>
      %54 = vector.shape_cast %53 : vector<32xf32> to vector<32x1xf32>
      %55 = vector.broadcast %54 : vector<32x1xf32> to vector<32x32xf32>
      %56 = arith.subf %52, %55 : vector<32x32xf32>
      %57 = math.exp %56 : vector<32x32xf32>
      %cst_29 = arith.constant dense<0.000000e+00> : vector<32xf32>
      %58 = vector.multi_reduction <add>, %57, %cst_29 [1] : vector<32x32xf32> to vector<32xf32>
      %59 = vector.shape_cast %58 : vector<32xf32> to vector<32x1xf32>
      %60 = vector.broadcast %59 : vector<32x1xf32> to vector<32x32xf32>
      %61 = arith.divf %57, %60 : vector<32x32xf32>
      %c0_30 = arith.constant 0 : index
      %c0_31 = arith.constant 0 : index
      %62 = vector.load %arg11[%c0_30, %c0_31] : memref<32x32xf32, #tpu.memory_space<vmem>>, vector<32x32xf32>
      tpu.vector_store %arg11[%c0_30, %c0_31], %61 {strides = array<i32>} : memref<32x32xf32, #tpu.memory_space<vmem>>, vector<32x32xf32>,
    } else {
    }
    %c1_i32_12 = arith.constant 1 : i32
    %28 = arith.cmpi eq, %arg1, %c1_i32_12 : i32
    %29 = arith.extui %28 : i1 to i32
    %c0_i32_13 = arith.constant 0 : i32
    %30 = arith.cmpi ne, %29, %c0_i32_13 : i32
    scf.if %30 {
      %c0_14 = arith.constant 0 : index
      %c0_15 = arith.constant 0 : index
      %31 = vector.load %arg6[%c0_14, %c0_15] : memref<32x32xf32, #tpu.memory_space<vmem>>, vector<32x32xf32>
      %cst_16 = arith.constant dense<0.000000e+00> : vector<16x32xf32>
      %32 = tpu.matmul %14, %31, %cst_16 {dimension_numbers = #tpu.dot_dimension_numbers<[1], [0], [0], [1], [0, 0, 1, 1], [], []>} : vector<16x32xf32>, vector<32x32xf32>, vector<16x32xf32> -> vector<16x32xf32>
      %c0_17 = arith.constant 0 : index
      %c0_18 = arith.constant 0 : index
      %33 = vector.load %arg11[%c0_17, %c0_18] : memref<32x32xf32, #tpu.memory_space<vmem>>, vector<32x32xf32>
      %cst_19 = arith.constant dense<0.000000e+00> : vector<16x32xf32>
      %34 = tpu.matmul %32, %33, %cst_19 {dimension_numbers = #tpu.dot_dimension_numbers<[1], [1], [0], [0], [0, 0, 1, 0], [], []>} : vector<16x32xf32>, vector<32x32xf32>, vector<16x32xf32> -> vector<16x32xf32>
      %c0_20 = arith.constant 0 : index
      %c0_21 = arith.constant 0 : index
      %35 = vector.load %arg9[%c0_20, %c0_21] : memref<32x32xf32, #tpu.memory_space<vmem>>, vector<32x32xf32>
      %cst_22 = arith.constant dense<0.000000e+00> : vector<16x32xf32>
      %36 = tpu.matmul %34, %35, %cst_22 {dimension_numbers = #tpu.dot_dimension_numbers<[1], [0], [0], [1], [0, 0, 1, 1], [], []>} : vector<16x32xf32>, vector<32x32xf32>, vector<16x32xf32> -> vector<16x32xf32>
      %c0_23 = arith.constant 0 : index
      %c0_24 = arith.constant 0 : index
      %c0_25 = arith.constant 0 : index
      %37 = vector.load %arg10[%c0_23, %c0_24, %c0_25] : memref<1x16x32xf32, #tpu.memory_space<vmem>>, vector<1x16x32xf32>
      %38 = vector.shape_cast %37 : vector<1x16x32xf32> to vector<16x32xf32>
      %39 = vector.shape_cast %36 : vector<16x32xf32> to vector<1x16x32xf32>
      tpu.vector_store %arg10[%c0_23, %c0_24, %c0_25], %39 {strides = array<i32>} : memref<1x16x32xf32, #tpu.memory_space<vmem>>, vector<1x16x32xf32>,
    } else {
    }
    return
  }
  func.func @transform_0(%arg0: i32, %arg1: i32, %arg2: i32) -> (i32, i32, i32) {
    %c0_i32 = arith.constant 0 : i32
    %c0_i32_0 = arith.constant 0 : i32
    return %arg0, %arg2, %c0_i32 : i32, i32, i32
  }
  func.func @transform_1(%arg0: i32, %arg1: i32, %arg2: i32) -> (i32, i32) {
    %c0_i32 = arith.constant 0 : i32
    %c0_i32_0 = arith.constant 0 : i32
    %c0_i32_1 = arith.constant 0 : i32
    return %c0_i32, %c0_i32_0 : i32, i32
  }
  func.func @transform_2(%arg0: i32, %arg1: i32, %arg2: i32) -> (i32, i32) {
    %c0_i32 = arith.constant 0 : i32
    %c0_i32_0 = arith.constant 0 : i32
    %c0_i32_1 = arith.constant 0 : i32
    return %c0_i32, %c0_i32_0 : i32, i32
  }
  func.func @transform_3(%arg0: i32, %arg1: i32, %arg2: i32) -> (i32, i32) {
    %c0_i32 = arith.constant 0 : i32
    %c0_i32_0 = arith.constant 0 : i32
    %c0_i32_1 = arith.constant 0 : i32
    return %c0_i32, %c0_i32_0 : i32, i32
  }
  func.func @transform_4(%arg0: i32, %arg1: i32, %arg2: i32) -> (i32, i32) {
    %c0_i32 = arith.constant 0 : i32
    %c0_i32_0 = arith.constant 0 : i32
    %c0_i32_1 = arith.constant 0 : i32
    return %c0_i32, %c0_i32_0 : i32, i32
  }
  func.func @transform_5(%arg0: i32, %arg1: i32, %arg2: i32) -> (i32, i32) {
    %c0_i32 = arith.constant 0 : i32
    %c0_i32_0 = arith.constant 0 : i32
    %c0_i32_1 = arith.constant 0 : i32
    return %c0_i32, %c0_i32_0 : i32, i32
  }
  func.func @transform_6(%arg0: i32, %arg1: i32, %arg2: i32) -> (i32, i32) {
    %c0_i32 = arith.constant 0 : i32
    %c0_i32_0 = arith.constant 0 : i32
    %c0_i32_1 = arith.constant 0 : i32
    return %c0_i32, %c0_i32_0 : i32, i32
  }
  func.func @transform_7(%arg0: i32, %arg1: i32, %arg2: i32) -> (i32, i32, i32) {
    %0 = arith.muli %arg2, %arg1 : i32
    %c0_i32 = arith.constant 0 : i32
    %c0_i32_0 = arith.constant 0 : i32
    return %arg0, %0, %c0_i32 : i32, i32, i32
  }
}

module attributes {stable_mosaic.version = 11 : i64} {
  func.func @_linear_attention_kernel(%arg0: i32, %arg1: i32, %arg2: i32, %arg3: memref<1x16x32xf32, #tpu.memory_space<vmem>>, %arg4: memref<1x32xf32, #tpu.memory_space<vmem>>, %arg5: memref<32x64xf32, #tpu.memory_space<vmem>>, %arg6: memref<32x32xf32, #tpu.memory_space<vmem>>, %arg7: memref<1x32xf32, #tpu.memory_space<vmem>>, %arg8: memref<32x32xf32, #tpu.memory_space<vmem>>, %arg9: memref<32x32xf32, #tpu.memory_space<vmem>>, %arg10: memref<1x16x32xf32, #tpu.memory_space<vmem>>, %arg11: memref<32x32xf32, #tpu.memory_space<vmem>>, %arg12: memref<1x32xf32, #tpu.memory_space<vmem>>, %arg13: memref<1x32xf32, #tpu.memory_space<vmem>>) attributes {dimension_semantics = [#tpu.dimension_semantics<parallel>, #tpu.dimension_semantics<arbitrary>, #tpu.dimension_semantics<arbitrary>], iteration_bounds = array<i64: 2, 2, 1>, scalar_prefetch = 0 : i64, scratch_operands = 3 : i64, tpu.core_type = #tpu.core_type<tc>, window_params = [{transform_indices = @transform_0, window_bounds = array<i64: 1, 16, 32>}, {pipeline_mode = #tpu.pipeline_mode<synchronous>, transform_indices = @transform_1, window_bounds = array<i64: 1, 32>}, {pipeline_mode = #tpu.pipeline_mode<synchronous>, transform_indices = @transform_2, window_bounds = array<i64: 32, 64>}, {pipeline_mode = #tpu.pipeline_mode<synchronous>, transform_indices = @transform_3, window_bounds = array<i64: 32, 32>}, {pipeline_mode = #tpu.pipeline_mode<synchronous>, transform_indices = @transform_4, window_bounds = array<i64: 1, 32>}, {pipeline_mode = #tpu.pipeline_mode<synchronous>, transform_indices = @transform_5, window_bounds = array<i64: 32, 32>}, {pipeline_mode = #tpu.pipeline_mode<synchronous>, transform_indices = @transform_6, window_bounds = array<i64: 32, 32>}, {transform_indices = @transform_7, window_bounds = array<i64: 1, 16, 32>}]} {
    %c0 = arith.constant 0 : index
    %c0_0 = arith.constant 0 : index
    %c0_1 = arith.constant 0 : index
    %0 = vector.load %arg3[%c0, %c0_0, %c0_1] : memref<1x16x32xf32, #tpu.memory_space<vmem>>, vector<1x16x32xf32>
    %1 = vector.shape_cast %0 : vector<1x16x32xf32> to vector<16x32xf32>
    %2 = arith.mulf %1, %1 : vector<16x32xf32>
    %cst = arith.constant dense<0.000000e+00> : vector<16xf32>
    %3 = vector.multi_reduction <add>, %2, %cst [1] : vector<16x32xf32> to vector<16xf32>
    %4 = vector.shape_cast %3 : vector<16xf32> to vector<16x1xf32>
    %5 = math.sqrt %4 : vector<16x1xf32>
    %cst_2 = arith.constant 9.99999996E-13 : f32
    %6 = vector.broadcast %cst_2 : f32 to vector<16x1xf32>
    %7 = arith.maximumf %5, %6 : vector<16x1xf32>
    %cst_3 = arith.constant 1.000000e+00 : f32
    %8 = vector.broadcast %cst_3 : f32 to vector<16x1xf32>
    %9 = arith.divf %8, %7 : vector<16x1xf32>
    %10 = vector.broadcast %9 : vector<16x1xf32> to vector<16x32xf32>
    %11 = arith.mulf %1, %10 : vector<16x32xf32>
    %c0_4 = arith.constant 0 : index
    %c0_5 = arith.constant 0 : index
    %12 = vector.load %arg4[%c0_4, %c0_5] : memref<1x32xf32, #tpu.memory_space<vmem>>, vector<1x32xf32>
    %13 = vector.broadcast %12 : vector<1x32xf32> to vector<16x32xf32>
    %14 = arith.mulf %11, %13 : vector<16x32xf32>
    %c0_i32 = arith.constant 0 : i32
    %15 = arith.cmpi eq, %arg1, %c0_i32 : i32
    %c0_i32_6 = arith.constant 0 : i32
    %16 = arith.cmpi eq, %arg2, %c0_i32_6 : i32
    %17 = arith.andi %15, %16 : i1
    %18 = arith.extui %17 : i1 to i32
    %c0_i32_7 = arith.constant 0 : i32
    %19 = arith.cmpi ne, %18, %c0_i32_7 : i32
    scf.if %19 {
      %cst_14 = arith.constant 0.000000e+00 : f32
      %31 = vector.broadcast %cst_14 : f32 to vector<32x32xf32>
      %c0_15 = arith.constant 0 : index
      %c0_16 = arith.constant 0 : index
      %32 = vector.load %arg11[%c0_15, %c0_16] : memref<32x32xf32, #tpu.memory_space<vmem>>, vector<32x32xf32>
      tpu.vector_store %arg11[%c0_15, %c0_16], %31 {strides = array<i32>} : memref<32x32xf32, #tpu.memory_space<vmem>>, vector<32x32xf32>,
      %cst_17 = arith.constant 0.000000e+00 : f32
      %33 = vector.broadcast %cst_17 : f32 to vector<1x32xf32>
      %c0_18 = arith.constant 0 : index
      %c0_19 = arith.constant 0 : index
      %34 = vector.load %arg12[%c0_18, %c0_19] : memref<1x32xf32, #tpu.memory_space<vmem>>, vector<1x32xf32>
      tpu.vector_store %arg12[%c0_18, %c0_19], %33 {strides = array<i32>} : memref<1x32xf32, #tpu.memory_space<vmem>>, vector<1x32xf32>,
      %cst_20 = arith.constant 0.000000e+00 : f32
      %35 = vector.broadcast %cst_20 : f32 to vector<1x32xf32>
      %c0_21 = arith.constant 0 : index
      %c0_22 = arith.constant 0 : index
      %36 = vector.load %arg13[%c0_21, %c0_22] : memref<1x32xf32, #tpu.memory_space<vmem>>, vector<1x32xf32>
      tpu.vector_store %arg13[%c0_21, %c0_22], %35 {strides = array<i32>} : memref<1x32xf32, #tpu.memory_space<vmem>>, vector<1x32xf32>,
    } else {
    }
    %c0_i32_8 = arith.constant 0 : i32
    %20 = arith.cmpi eq, %arg1, %c0_i32_8 : i32
    %21 = arith.extui %20 : i1 to i32
    %c0_i32_9 = arith.constant 0 : i32
    %22 = arith.cmpi ne, %21, %c0_i32_9 : i32
    scf.if %22 {
      %c0_14 = arith.constant 0 : index
      %c0_15 = arith.constant 0 : index
      %31 = vector.load %arg5[%c0_14, %c0_15] : memref<32x64xf32, #tpu.memory_space<vmem>>, vector<32x64xf32>
      %cst_16 = arith.constant dense<0.000000e+00> : vector<16x64xf32>
      %32 = tpu.matmul %14, %31, %cst_16 {dimension_numbers = #tpu.dot_dimension_numbers<[1], [0], [0], [1], [0, 0, 1, 1], [], []>} : vector<16x32xf32>, vector<32x64xf32>, vector<16x64xf32> -> vector<16x64xf32>
      %33 = vector.extract_strided_slice %32 {offsets = [0, 0], sizes = [16, 32], strides = [1, 1]} : vector<16x64xf32> to vector<16x32xf32>
      %34 = vector.extract_strided_slice %32 {offsets = [0, 32], sizes = [16, 32], strides = [1, 1]} : vector<16x64xf32> to vector<16x32xf32>
      %c0_17 = arith.constant 0 : index
      %c0_18 = arith.constant 0 : index
      %35 = vector.load %arg12[%c0_17, %c0_18] : memref<1x32xf32, #tpu.memory_space<vmem>>, vector<1x32xf32>
      %36 = arith.mulf %33, %33 : vector<16x32xf32>
      %cst_19 = arith.constant dense<0.000000e+00> : vector<32xf32>
      %37 = vector.multi_reduction <add>, %36, %cst_19 [0] : vector<16x32xf32> to vector<32xf32>
      %38 = vector.shape_cast %37 : vector<32xf32> to vector<1x32xf32>
      %39 = arith.addf %35, %38 : vector<1x32xf32>
      %c0_20 = arith.constant 0 : index
      %c0_21 = arith.constant 0 : index
      %40 = vector.load %arg12[%c0_20, %c0_21] : memref<1x32xf32, #tpu.memory_space<vmem>>, vector<1x32xf32>
      tpu.vector_store %arg12[%c0_20, %c0_21], %39 {strides = array<i32>} : memref<1x32xf32, #tpu.memory_space<vmem>>, vector<1x32xf32>,
      %c0_22 = arith.constant 0 : index
      %c0_23 = arith.constant 0 : index
      %41 = vector.load %arg13[%c0_22, %c0_23] : memref<1x32xf32, #tpu.memory_space<vmem>>, vector<1x32xf32>
      %42 = arith.mulf %34, %34 : vector<16x32xf32>
      %cst_24 = arith.constant dense<0.000000e+00> : vector<32xf32>
      %43 = vector.multi_reduction <add>, %42, %cst_24 [0] : vector<16x32xf32> to vector<32xf32>
      %44 = vector.shape_cast %43 : vector<32xf32> to vector<1x32xf32>
      %45 = arith.addf %41, %44 : vector<1x32xf32>
      %c0_25 = arith.constant 0 : index
      %c0_26 = arith.constant 0 : index
      %46 = vector.load %arg13[%c0_25, %c0_26] : memref<1x32xf32, #tpu.memory_space<vmem>>, vector<1x32xf32>
      tpu.vector_store %arg13[%c0_25, %c0_26], %45 {strides = array<i32>} : memref<1x32xf32, #tpu.memory_space<vmem>>, vector<1x32xf32>,
      %c0_27 = arith.constant 0 : index
      %c0_28 = arith.constant 0 : index
      %47 = vector.load %arg11[%c0_27, %c0_28] : memref<32x32xf32, #tpu.memory_space<vmem>>, vector<32x32xf32>
      %cst_29 = arith.constant dense<0.000000e+00> : vector<32x32xf32>
      %48 = tpu.matmul %33, %34, %cst_29 {dimension_numbers = #tpu.dot_dimension_numbers<[0], [0], [1], [1], [0, 1, 1, 1], [], []>} : vector<16x32xf32>, vector<16x32xf32>, vector<32x32xf32> -> vector<32x32xf32>
      %49 = arith.addf %47, %48 : vector<32x32xf32>
      %c0_30 = arith.constant 0 : index
      %c0_31 = arith.constant 0 : index
      %50 = vector.load %arg11[%c0_30, %c0_31] : memref<32x32xf32, #tpu.memory_space<vmem>>, vector<32x32xf32>
      tpu.vector_store %arg11[%c0_30, %c0_31], %49 {strides = array<i32>} : memref<32x32xf32, #tpu.memory_space<vmem>>, vector<32x32xf32>,
    } else {
    }
    %c1_i32 = arith.constant 1 : i32
    %23 = arith.cmpi eq, %arg1, %c1_i32 : i32
    %c0_i32_10 = arith.constant 0 : i32
    %24 = arith.cmpi eq, %arg2, %c0_i32_10 : i32
    %25 = arith.andi %23, %24 : i1
    %26 = arith.extui %25 : i1 to i32
    %c0_i32_11 = arith.constant 0 : i32
    %27 = arith.cmpi ne, %26, %c0_i32_11 : i32
    scf.if %27 {
      %c0_14 = arith.constant 0 : index
      %c0_15 = arith.constant 0 : index
      %31 = vector.load %arg12[%c0_14, %c0_15] : memref<1x32xf32, #tpu.memory_space<vmem>>, vector<1x32xf32>
      %32 = math.sqrt %31 : vector<1x32xf32>
      %cst_16 = arith.constant 9.99999996E-13 : f32
      %33 = vector.broadcast %cst_16 : f32 to vector<1x32xf32>
      %34 = arith.maximumf %32, %33 : vector<1x32xf32>
      %cst_17 = arith.constant 1.000000e+00 : f32
      %35 = vector.broadcast %cst_17 : f32 to vector<1x32xf32>
      %36 = arith.divf %35, %34 : vector<1x32xf32>
      %c0_18 = arith.constant 0 : index
      %c0_19 = arith.constant 0 : index
      %37 = vector.load %arg13[%c0_18, %c0_19] : memref<1x32xf32, #tpu.memory_space<vmem>>, vector<1x32xf32>
      %38 = math.sqrt %37 : vector<1x32xf32>
      %cst_20 = arith.constant 9.99999996E-13 : f32
      %39 = vector.broadcast %cst_20 : f32 to vector<1x32xf32>
      %40 = arith.maximumf %38, %39 : vector<1x32xf32>
      %cst_21 = arith.constant 1.000000e+00 : f32
      %41 = vector.broadcast %cst_21 : f32 to vector<1x32xf32>
      %42 = arith.divf %41, %40 : vector<1x32xf32>
      %c0_22 = arith.constant 0 : index
      %c0_23 = arith.constant 0 : index
      %43 = vector.load %arg7[%c0_22, %c0_23] : memref<1x32xf32, #tpu.memory_space<vmem>>, vector<1x32xf32>
      %44 = arith.mulf %43, %36 : vector<1x32xf32>
      %45 = tpu.transpose %44, [1, 0] : vector<1x32xf32> -> vector<32x1xf32>
      %c0_24 = arith.constant 0 : index
      %c0_25 = arith.constant 0 : index
      %46 = vector.load %arg11[%c0_24, %c0_25] : memref<32x32xf32, #tpu.memory_space<vmem>>, vector<32x32xf32>
      %47 = vector.broadcast %45 : vector<32x1xf32> to vector<32x32xf32>
      %48 = arith.mulf %46, %47 : vector<32x32xf32>
      %49 = vector.broadcast %42 : vector<1x32xf32> to vector<32x32xf32>
      %50 = arith.mulf %48, %49 : vector<32x32xf32>
      %c0_26 = arith.constant 0 : index
      %c0_27 = arith.constant 0 : index
      %51 = vector.load %arg8[%c0_26, %c0_27] : memref<32x32xf32, #tpu.memory_space<vmem>>, vector<32x32xf32>
      %52 = arith.addf %50, %51 : vector<32x32xf32>
      %cst_28 = arith.constant dense<0xFF800000> : vector<32xf32>
      %53 = vector.multi_reduction <maximumf>, %52, %cst_28 [1] : vector<32x32xf32> to vector<32xf32>
      %54 = vector.shape_cast %53 : vector<32xf32> to vector<32x1xf32>
      %55 = vector.broadcast %54 : vector<32x1xf32> to vector<32x32xf32>
      %56 = arith.subf %52, %55 : vector<32x32xf32>
      %57 = math.exp %56 : vector<32x32xf32>
      %cst_29 = arith.constant dense<0.000000e+00> : vector<32xf32>
      %58 = vector.multi_reduction <add>, %57, %cst_29 [1] : vector<32x32xf32> to vector<32xf32>
      %59 = vector.shape_cast %58 : vector<32xf32> to vector<32x1xf32>
      %60 = vector.broadcast %59 : vector<32x1xf32> to vector<32x32xf32>
      %61 = arith.divf %57, %60 : vector<32x32xf32>
      %c0_30 = arith.constant 0 : index
      %c0_31 = arith.constant 0 : index
      %62 = vector.load %arg11[%c0_30, %c0_31] : memref<32x32xf32, #tpu.memory_space<vmem>>, vector<32x32xf32>
      tpu.vector_store %arg11[%c0_30, %c0_31], %61 {strides = array<i32>} : memref<32x32xf32, #tpu.memory_space<vmem>>, vector<32x32xf32>,
    } else {
    }
    %c1_i32_12 = arith.constant 1 : i32
    %28 = arith.cmpi eq, %arg1, %c1_i32_12 : i32
    %29 = arith.extui %28 : i1 to i32
    %c0_i32_13 = arith.constant 0 : i32
    %30 = arith.cmpi ne, %29, %c0_i32_13 : i32
    scf.if %30 {
      %c0_14 = arith.constant 0 : index
      %c0_15 = arith.constant 0 : index
      %31 = vector.load %arg6[%c0_14, %c0_15] : memref<32x32xf32, #tpu.memory_space<vmem>>, vector<32x32xf32>
      %cst_16 = arith.constant dense<0.000000e+00> : vector<16x32xf32>
      %32 = tpu.matmul %14, %31, %cst_16 {dimension_numbers = #tpu.dot_dimension_numbers<[1], [0], [0], [1], [0, 0, 1, 1], [], []>} : vector<16x32xf32>, vector<32x32xf32>, vector<16x32xf32> -> vector<16x32xf32>
      %c0_17 = arith.constant 0 : index
      %c0_18 = arith.constant 0 : index
      %33 = vector.load %arg11[%c0_17, %c0_18] : memref<32x32xf32, #tpu.memory_space<vmem>>, vector<32x32xf32>
      %cst_19 = arith.constant dense<0.000000e+00> : vector<16x32xf32>
      %34 = tpu.matmul %32, %33, %cst_19 {dimension_numbers = #tpu.dot_dimension_numbers<[1], [1], [0], [0], [0, 0, 1, 0], [], []>} : vector<16x32xf32>, vector<32x32xf32>, vector<16x32xf32> -> vector<16x32xf32>
      %c0_20 = arith.constant 0 : index
      %c0_21 = arith.constant 0 : index
      %35 = vector.load %arg9[%c0_20, %c0_21] : memref<32x32xf32, #tpu.memory_space<vmem>>, vector<32x32xf32>
      %cst_22 = arith.constant dense<0.000000e+00> : vector<16x32xf32>
      %36 = tpu.matmul %34, %35, %cst_22 {dimension_numbers = #tpu.dot_dimension_numbers<[1], [0], [0], [1], [0, 0, 1, 1], [], []>} : vector<16x32xf32>, vector<32x32xf32>, vector<16x32xf32> -> vector<16x32xf32>
      %c0_23 = arith.constant 0 : index
      %c0_24 = arith.constant 0 : index
      %c0_25 = arith.constant 0 : index
      %37 = vector.load %arg10[%c0_23, %c0_24, %c0_25] : memref<1x16x32xf32, #tpu.memory_space<vmem>>, vector<1x16x32xf32>
      %38 = vector.shape_cast %37 : vector<1x16x32xf32> to vector<16x32xf32>
      %39 = vector.shape_cast %36 : vector<16x32xf32> to vector<1x16x32xf32>
      tpu.vector_store %arg10[%c0_23, %c0_24, %c0_25], %39 {strides = array<i32>} : memref<1x16x32xf32, #tpu.memory_space<vmem>>, vector<1x16x32xf32>,
    } else {
    }
    return
  }
  func.func @transform_0(%arg0: i32, %arg1: i32, %arg2: i32) -> (i32, i32, i32) {
    %c0_i32 = arith.constant 0 : i32
    %c0_i32_0 = arith.constant 0 : i32
    return %arg0, %arg2, %c0_i32 : i32, i32, i32
  }
  func.func @transform_1(%arg0: i32, %arg1: i32, %arg2: i32) -> (i32, i32) {
    %c0_i32 = arith.constant 0 : i32
    %c0_i32_0 = arith.constant 0 : i32
    %c0_i32_1 = arith.constant 0 : i32
    return %c0_i32, %c0_i32_0 : i32, i32
  }
  func.func @transform_2(%arg0: i32, %arg1: i32, %arg2: i32) -> (i32, i32) {
    %c0_i32 = arith.constant 0 : i32
    %c0_i32_0 = arith.constant 0 : i32
    %c0_i32_1 = arith.constant 0 : i32
    return %c0_i32, %c0_i32_0 : i32, i32
  }
  func.func @transform_3(%arg0: i32, %arg1: i32, %arg2: i32) -> (i32, i32) {
    %c0_i32 = arith.constant 0 : i32
    %c0_i32_0 = arith.constant 0 : i32
    %c0_i32_1 = arith.constant 0 : i32
    return %c0_i32, %c0_i32_0 : i32, i32
  }
  func.func @transform_4(%arg0: i32, %arg1: i32, %arg2: i32) -> (i32, i32) {
    %c0_i32 = arith.constant 0 : i32
    %c0_i32_0 = arith.constant 0 : i32
    %c0_i32_1 = arith.constant 0 : i32
    return %c0_i32, %c0_i32_0 : i32, i32
  }
  func.func @transform_5(%arg0: i32, %arg1: i32, %arg2: i32) -> (i32, i32) {
    %c0_i32 = arith.constant 0 : i32
    %c0_i32_0 = arith.constant 0 : i32
    %c0_i32_1 = arith.constant 0 : i32
    return %c0_i32, %c0_i32_0 : i32, i32
  }
  func.func @transform_6(%arg0: i32, %arg1: i32, %arg2: i32) -> (i32, i32) {
    %c0_i32 = arith.constant 0 : i32
    %c0_i32_0 = arith.constant 0 : i32
    %c0_i32_1 = arith.constant 0 : i32
    return %c0_i32, %c0_i32_0 : i32, i32
  }
  func.func @transform_7(%arg0: i32, %arg1: i32, %arg2: i32) -> (i32, i32, i32) {
    %0 = arith.muli %arg2, %arg1 : i32
    %c0_i32 = arith.constant 0 : i32
    %c0_i32_0 = arith.constant 0 : i32
    return %arg0, %0, %c0_i32 : i32, i32, i32
  }
}

</mosaic_0001>

<bundles_post_ra>
// kernel: tpu_custom_call.1
= control target key start
LH: loop header
LB: loop body
LE: loop exit
PB: predicated region body
PF: predicated region fallthrough
CT: control target
= control target key end

     0   :  { %s2055_s0 = inlined_call_operand.hbm [shape: f32[2,16,32], index: 0, kind: input, shape index: {}]   ;;  %s2056_s1 = inlined_call_operand.hbm [shape: f32[1,32], index: 1, kind: input, shape index: {}]   ;;  %s2057_s2 = inlined_call_operand.hbm [shape: f32[32,64], index: 2, kind: input, shape index: {}]   ;;  %s2058_s3 = inlined_call_operand.hbm [shape: f32[32,32], index: 3, kind: input, shape index: {}]   ;;  %s2059_s4 = inlined_call_operand.vmem [shape: f32[1,32], index: 4, kind: input, shape index: {}]   ;;  %s2060_s5 = inlined_call_operand.hbm [shape: f32[32,32], index: 5, kind: input, shape index: {}]   ;;  %s2061_s6 = inlined_call_operand.hbm [shape: f32[32,32], index: 6, kind: input, shape index: {}]   ;;  %s2062_s7 = inlined_call_operand.hbm [shape: f32[2,16,32], index: 7, kind: output, shape index: {}]  }
   0x1   :  { %2068 = sst [smem:[#allocation25_spill]] %s2056_s1 }
   0x2   :  { %2069 = sst [smem:[#allocation26_spill]] %s2057_s2 }
   0x3   :  { %2070 = sst [smem:[#allocation27_spill]] %s2058_s3 }
   0x4   :  { %2071 = sst [smem:[#allocation28_spill]] %s2060_s5 }
   0x5   :  { %2072 = sst [smem:[#allocation29_spill]] %s2061_s6 }
   0x6   :  { %12 = vsyncpa [#allocation6], 0 }
   0x7   :  { %14 = vsyncpa [#allocation6 + $0x1], 0 }
   0x8   :  { %15 = vsyncpa [#allocation9], 0 }
   0x9   :  { %16 = vsyncpa [#allocation12], 0 }
   0xa   :  { %17 = vsyncpa [#allocation15], 0 }
   0xb   :  { %18 = vsyncpa [#allocation7], 0 }
   0xc   :  { %20 = vsyncpa [#allocation7 + $0x1], 0  ;;  %s1758_s24 = smov 0   ;;  %s1760_s25 = smov 0  }
   0xd   :  { %s1762_s26 = smov 0   ;;  %s1764_s27 = smov 0  }
   0xe   :  { %s1766_s28 = smov 0   ;;  %s1768_s29 = smov 0  }
   0xf   :  { %s1770_s30 = smov 0   ;;  %s1772_s8 = smov 0  }
  0x10 LB: > { %2073 = sst [smem:[#allocation22_spill]] %s1696_s29  ;;  %s2063_s9 = sadd.s32 4294967295, %s1704_s8   ;;  %s1704_s8 = sphi %s1772_s8, %s26_s8   ;;  %s1700_s30 = sphi %s1770_s30, %s2098_s30   ;;  %s1696_s29 = sphi %s1768_s29, %s2092_s29   ;;  %s1692_s28 = sphi %s1766_s28, %s2097_s28   ;;  %s1688_s27 = sphi %s1764_s27, %s2091_s27   ;;  %s1684_s26 = sphi %s1762_s26, %s2096_s26   ;;  %s1680_s25 = sphi %s1760_s25, %s2095_s25   ;;  %s1676_s24 = sphi %s1758_s24, %s2094_s24  }
  0x11   : > { %p1178_p0 = scmp.ge.s32.totalorder %s1704_s8, 1  ;;  %p1802_p1 = scmp.eq.s32.totalorder %s2063_s9, 0 }
  0x12   : > { %p234_p2 = scmp.lt.s32.totalorder %s1704_s8, 5  ;;  %s2075_s1 = sld [smem:[#allocation25_spill]] }
  0x13   : > { %s1706_s15 = smov [#allocation8]   ;;  %s2078_s3 = sld [smem:[#allocation27_spill]] }
  0x14   : > { %p1810_p3 = pnand %p1178_p0, %p234_p2  ;;  %s248_s16 = sshll.u32 %s1706_s15, 4  ;;  %s249_s16 = int_to_ptr.vmem [resolvable:$true] %s248_s16 }
  0x15   : > { %s1707_s21 = smov [#allocation11]   ;;  %s2079_s2 = sld [smem:[#allocation26_spill]] }
  0x16   : > { %p1259_p4 = pneg %p1810_p3  ;;  %s273_s22 = sshll.u32 %s1707_s21, 4  ;;  %s274_s22 = int_to_ptr.vmem [resolvable:$true] %s273_s22 }
  0x17   : > { %s2064_s15 = smov 128   ;;  %s2065_s9 = smov 8  }
  0x18   : > { %s246_s13 = sshll.u32 %s2075_s1, 4  ;;  %p1818_p5 = pnand %p1259_p4, %p1802_p1  ;;  %s247_s13 = int_to_ptr.hbm [resolvable:$true] %s246_s13 }
  0x19   : > { %s271_s20 = sshll.u32 %s2078_s3, 4  ;;  %s2080_s5 = sld [smem:[#allocation28_spill]]  ;;  %s272_s20 = int_to_ptr.hbm [resolvable:$true] %s271_s20 }
  0x1a   : > { %1262 = dma.hbm_to_vmem [thread:$0]  (!%p1818_p5), %s247_s13, 16, %s249_s16, [#allocation9]  }
  0x1b   : > { %s257_s12 = sshll.u32 %s2079_s2, 4  ;;  %s1710_s16 = smov [#allocation10]   ;;  %s258_s12 = int_to_ptr.hbm [resolvable:$true] %s257_s12 }
  0x1c   : > { %1268 = dma.hbm_to_vmem [thread:$0]  (!%p1818_p5), %s272_s20, 512, %s274_s22, [#allocation12], %s2064_s15, %s2064_s15, %s2065_s9  }
  0x1d   : > { %s259_s21 = sshll.u32 %s1710_s16, 4  ;;  %s1711_s20 = smov [#allocation13]   ;;  %s260_s21 = int_to_ptr.vmem [resolvable:$true] %s259_s21 }
  0x1e   : > { %1265 = dma.hbm_to_vmem [thread:$0]  (!%p1818_p5), %s258_s12, 512, %s260_s21, [#allocation9], %s2064_s15, %s2064_s15, %s2065_s9  }
  0x1f   : > { %s288_s13 = sshll.u32 %s2080_s5, 4  ;;  %s290_s22 = sshll.u32 %s1711_s20, 4  ;;  %s289_s13 = int_to_ptr.hbm [resolvable:$true] %s288_s13  ;;  %s291_s22 = int_to_ptr.vmem [resolvable:$true] %s290_s22 }
  0x20   : > { %s2081_s6 = sld [smem:[#allocation29_spill]]  ;;  %s1712_s12 = smov [#allocation14]  }
  0x21   : > { %1271 = dma.hbm_to_vmem [thread:$0]  (!%p1818_p5), %s289_s13, 512, %s291_s22, [#allocation12], %s2064_s15, %s2064_s15, %s2065_s9  }
  0x22   : > { %s304_s19 = sshll.u32 %s1712_s12, 4  ;;  %s1177_s16 = sadd.s32 4294967294, %s1704_s8   ;;  %s305_s19 = int_to_ptr.vmem [resolvable:$true] %s304_s19 }
  0x23   : > { %s41_s21 = sadd.s32 1, %s1696_s29  ;;  %s45_s20 = sadd.s32 1, %s1700_s30 }
  0x24   : > { %p43_p6 = scmp.ge.s32.totalorder %s41_s21, 2  ;;  %s54_s23 = sadd.s32 1, %s1684_s26 }
  0x25   : > { %p61_p7 = scmp.ne.s32.totalorder %s1684_s26, %s1680_s25  ;;  %p62_p8 = scmp.eq.s32.totalorder %s1704_s8, 0 }
  0x26   : > { %s302_s18 = sshll.u32 %s2081_s6, 4  ;;  %s2100_s21 = smov (%p43_p6, %s41_s21), 0  ;;  %s303_s18 = int_to_ptr.hbm [resolvable:$true] %s302_s18 }
  0x27   : > { %1274 = dma.hbm_to_vmem [thread:$0]  (!%p1818_p5), %s303_s18, 512, %s305_s19, [#allocation15], %s2064_s15, %s2064_s15, %s2065_s9  }
  0x28   : > { %2082 = sst [smem:[#allocation23_spill]] %s2100_s21  ;;  %s2102_s20 = smov (!%p43_p6, %s45_s20), %s1700_s30 }
  0x29   : > { %p1866_p9 = por %p62_p8, %p61_p7  ;;  %p67_p10 = scmp.ne.s32.totalorder %s1680_s25, %s1676_s24 }
  0x2a   : > { %p47_p11 = scmp.ge.s32.totalorder %s2102_s20, 2  ;;  %s2084_s13 = sadd.s32 4294967295, %s1704_s8  }
  0x2b   : > { %p221_p12 = scmp.eq.s32.totalorder %s2084_s13, 3  ;;  %p1876_p13 = por %p1802_p1, %p67_p10 }
  0x2c   : > { %p227_p0 = scmp.eq.s32.totalorder %s1177_s16, 3  ;;  %s2104_s20 = smov (%p47_p11, %s2102_s20), 0 }
  0x2d   : > { %2086 = sst [smem:[#allocation24_spill]] %s2104_s20  ;;  %p1882_p2 = por %p221_p12, %p61_p7 }
  0x2e   : > { %p1886_p4 = por %p227_p0, %p67_p10  ;;  %s49_s12 = ssub.s32 %s1700_s30, %s2104_s20 }
  0x2f   : > { %p1288_p5 = scmp.lt.s32.totalorder %s1704_s8, 4  ;;  %p52_p6 = scmp.eq.s32.totalorder %s49_s12, 0 }
  0x30   : > { %s318_s19 = sand.u32 1, %s1684_s26   ;;  %s1221_s16 = sshll.u32 %s1700_s30, 4 }
  0x31   : > { %s1185_s13 = sshll.u32 %s318_s19, 4  ;;  %s329_s2 = scalar_lea.hbm %s2055_s0, %s1221_s16 }
  0x32   : > { %s1895_s15 = scalar_select %p52_p6, %s1684_s26, %s54_s23  }
  0x33   : > { %s322_s3 = scalar_lea.vmem [#allocation5], %s1185_s13  ;;  %s330_s6 = sshll.u32 %s329_s2, 4  ;;  %s331_s6 = int_to_ptr.hbm [resolvable:$true] %s330_s6 }
  0x34   : > { %s332_s5 = sshll.u32 %s322_s3, 4  ;;  %p1276_p7 = pnand %p1288_p5, %p1866_p9  ;;  %s333_s5 = int_to_ptr.vmem [resolvable:$true] %s332_s5 }
  0x35   : > { %s319_s21 = scalar_lea.sflag [#allocation6], %s318_s19  ;;  %s2089_s20 = smov 8  }
  0x36   : > { %s2090_s29 = smov 128   ;;  %344 = sbr.rel (%p1810_p3) target bundleno = 1793 (0x701), region = 48 }
  0x37   : > { %1278 = dma.hbm_to_vmem [thread:$0]  (!%p1276_p7), %s331_s6, 256, %s333_s5, %s319_s21, %s2090_s29, %s2090_s29, %s2089_s20  }
  0x38   : > { %s1909_s23 = sand.u32 (!%p1810_p3), 1, %s1680_s25  }
  0x39   : > { %s1189_s1 = sshll.u32 (!%p1810_p3), %s1909_s23, 4  ;;  %s347_s2 = scalar_lea.sflag (!%p1810_p3), [#allocation6], %s1909_s23 }
  0x3a   : > { %s350_s3 = scalar_lea.vmem (!%p1810_p3), [#allocation5], %s1189_s1 }
  0x3b   : > { %1655 = dma.done.wait (%p1876_p13), %s347_s2, 256  }
  0x3c   : > { %1657 = vsyncadd (%p1876_p13), %s347_s2, 4294967040 }
  0x3d   : > { %1659 = dma.done.wait (%p1802_p1), [#allocation9], 528  }
  0x3e   : > { %1661 = vsyncadd (%p1802_p1), [#allocation9], 4294966768 }
  0x3f   : > { %1663 = dma.done.wait (%p1802_p1), [#allocation12], 1024  }
  0x40   : > { %1665 = vsyncadd (%p1802_p1), [#allocation12], 4294966272 }
  0x41   : > { %1667 = dma.done.wait (%p1802_p1), [#allocation15], 512  }
  0x42   : > { %1669 = vsyncadd (%p1802_p1), [#allocation15], 4294966784  ;;  %v410_v0 = vld [vmem:[%s350_s3] sm:$0xff]  ;;  %vm414_vm0 = vcmask 261120   ;;  %v1931_v2 = vld [vmem:[%s350_s3 + $0x8] sm:$0xff]  ;;  %p485_p3 = scmp.eq.s32.totalorder %s1688_s27, 0 }
  0x43   : > { %v412_v1 = vmul.f32 %v410_v0, %v410_v0  ;;  %v413_v4 = vmul.f32 %v1931_v2, %v1931_v2  ;;  %v1373_v39 = vld [vmem:[#allocation8] ss:$0 sm:$0xff]  ;;  %s1945_s5 = scalar_lea.vmem [#allocation16], %s1189_s1  ;;  %v1713_v55 = vmov (%p485_p3), 0.0   ;;  %vm495_vm13 = vcmask (%p485_p3), 253952  }
  0x44   : > { %491 = vst.msk [vmem:[#allocation2] sm:$0xff] (%p485_p3), %vm414_vm0, %v1713_v55 }
  0x45   : > { %v415_v3 = vsel %vm414_vm0, %v412_v1, 0.0  ;;  %v418_v5 = vsel %vm414_vm0, %v413_v4, 0.0  ;;  %492 = vst.msk [vmem:[#allocation2 + $0x8] sm:$0xff] (%p485_p3), %vm414_vm0, %v1713_v55 }
  0x46   : > { %416 = vadd.xlane.f32.xlu0 %v415_v3  ;;  %493 = vst.msk [vmem:[#allocation2 + $0x10] sm:$0xff] (%p485_p3), %vm414_vm0, %v1713_v55 }
  0x47   : > { %494 = vst.msk [vmem:[#allocation2 + $0x18] sm:$0xff] (%p485_p3), %vm414_vm0, %v1713_v55 }
  0x48   : > { %496 = vst.msk [vmem:[#allocation3] sm:$0x1] (%p485_p3), %vm495_vm13, %v1713_v55 }
  0x49   : > { %497 = vst.msk [vmem:[#allocation4] sm:$0x1] (%p485_p3), %vm495_vm13, %v1713_v55 }
  0x4e   : > { %419 = vadd.xlane.f32.xlu0 %v418_v5 }
  0xb9   : > { %v417_v6 = vpop.xlane.xlu0 %416 }
  0xba   : > { %1374 = vrsqrt.f32 %v417_v6  ;;  %vm428_vm1 = vcmp.eq.f32.partialorder %v417_v6, inf  ;;  %v431_v18 = vand.u32 2147483648, %v417_v6  ;;  %vm430_vm2 = vcmp.eq.f32.partialorder %v417_v6, 0.0 }
  0xc0   : > { %v1375_v7 = vpop.eup %1374 }
  0xc1   : > { %v422_v8 = vmul.f32 %v1375_v7, %v417_v6  ;;  %v420_v9 = vpop.xlane.xlu0 %419 }
  0xc2   : > { %1376 = vrsqrt.f32 %v420_v9  ;;  %vm440_vm3 = vcmp.eq.f32.partialorder %v420_v9, inf  ;;  %v443_v26 = vand.u32 2147483648, %v420_v9  ;;  %vm442_vm4 = vcmp.eq.f32.partialorder %v420_v9, 0.0 }
  0xc3   : > { %v423_v10 = vmul.f32 %v1375_v7, %v422_v8 }
  0xc5   : > { %v424_v11 = vmul.f32 0.5, %v423_v10 }
  0xc7   : > { %v425_v12 = vsub.f32 1.5, %v424_v11 }
  0xc8   : > { %v1377_v13 = vpop.eup %1376 }
  0xc9   : > { %v426_v14 = vmul.f32 %v1375_v7, %v425_v12  ;;  %v434_v15 = vmul.f32 %v1377_v13, %v420_v9 }
  0xcb   : > { %v427_v16 = vmul.f32 %v426_v14, %v417_v6  ;;  %v435_v17 = vmul.f32 %v1377_v13, %v434_v15 }
  0xcd   : > { %v429_v19 = vsel %vm428_vm1, %v417_v6, %v427_v16  ;;  %v436_v20 = vmul.f32 0.5, %v435_v17 }
  0xce   : > { %v432_v21 = vsel %vm430_vm2, %v431_v18, %v429_v19 }
  0xcf   : > { %v445_v22 = vmax.f32 %v432_v21, 1e-12  ;;  %v437_v23 = vsub.f32 1.5, %v436_v20 }
  0xd1   : > { %1378 = vrcp.f32 %v445_v22  ;;  %v438_v24 = vmul.f32 %v1377_v13, %v437_v23  ;;  %v458_v33 = vand.u32 2147483648, %v445_v22  ;;  %v456_v35 = vand.u32 2147483647, %v445_v22 }
  0xd2   : > { %vm452_vm6 = vweird.f32 %v445_v22 }
  0xd3   : > { %v439_v25 = vmul.f32 %v438_v24, %v420_v9  ;;  %v459_v37 = vor.u32 1.1754944e-38, %v458_v33  ;;  %vm457_vm8 = vcmp.eq.f32.partialorder %v456_v35, 8.507059e+37 }
  0xd5   : > { %v441_v27 = vsel %vm440_vm3, %v420_v9, %v439_v25 }
  0xd6   : > { %v444_v29 = vsel %vm442_vm4, %v443_v26, %v441_v27 }
  0xd7   : > { %v1379_v28 = vpop.eup %1378  ;;  %v446_v31 = vmax.f32 %v444_v29, 1e-12 }
  0xd8   : > { %v448_v30 = vmul.f32 %v1379_v28, %v445_v22  ;;  %vm453_vm5 = vweird.f32 %v1379_v28 }
  0xd9   : > { %1380 = vrcp.f32 %v446_v31  ;;  %vm454_vm7 = vmor %vm452_vm6, %vm453_vm5  ;;  %v473_v46 = vand.u32 2147483648, %v446_v31  ;;  %v471_v48 = vand.u32 2147483647, %v446_v31  ;;  %vm467_vm10 = vweird.f32 %v446_v31 }
  0xda   : > { %v449_v32 = vsub.f32 1.0, %v448_v30 }
  0xdb   : > { %v474_v50 = vor.u32 1.1754944e-38, %v473_v46  ;;  %vm472_vm12 = vcmp.eq.f32.partialorder %v471_v48, 8.507059e+37 }
  0xdc   : > { %v450_v34 = vmul.f32 %v1379_v28, %v449_v32 }
  0xde   : > { %v451_v36 = vadd.f32 %v1379_v28, %v450_v34 }
  0xdf   : > { %v1381_v38 = vpop.eup %1380 }
  0xe0   : > { %v455_v40 = vsel %vm454_vm7, %v1379_v28, %v451_v36  ;;  %v463_v42 = vmul.f32 %v1381_v38, %v446_v31  ;;  %vm468_vm9 = vweird.f32 %v1381_v38 }
  0xe1   : > { %v460_v41 = vsel %vm457_vm8, %v459_v37, %v455_v40  ;;  %vm469_vm11 = vmor %vm467_vm10, %vm468_vm9 }
  0xe2   : > { %v477_v43 = vmul.f32 %v460_v41, %v410_v0  ;;  %v464_v44 = vsub.f32 1.0, %v463_v42 }
  0xe4   : > { %v1938_v45 = vmul.f32 %v1373_v39, %v477_v43  ;;  %v465_v47 = vmul.f32 %v1381_v38, %v464_v44 }
  0xe6   : > { %v466_v49 = vadd.f32 %v1381_v38, %v465_v47 }
  0xe8   : > { %v470_v51 = vsel %vm469_vm11, %v1381_v38, %v466_v49  ;;  %490 = sbr.rel (!%p485_p3) target bundleno = 237 (0xed), region = 76 }
  0xe9   : > { %v475_v52 = vsel %vm472_vm12, %v474_v50, %v470_v51 }
  0xea   : > { %v478_v53 = vmul.f32 %v475_v52, %v1931_v2 }
  0xec   : > { %v1941_v54 = vmul.f32 %v1373_v39, %v478_v53 }
  0xed PF: > { %p1197_p1 = scmp.ne.s32.totalorder %s1688_s27, 0 }
  0xee   : > { %s1714_s6 = smov (!%p1197_p1), 96  }
  0xef   : > { %500 = sbr.rel (%p1197_p1) target bundleno = 744 (0x2e8), region = 80 }
  0xf4   : > { %v504_v56 = vld [vmem:[#allocation10 + $0x18] sm:$0xff]  ;;  %v503_v57 = vld [vmem:[#allocation10 + $0x10] sm:$0xff]  ;;  %v502_v58 = vld [vmem:[#allocation10 + $0x8] sm:$0xff]  ;;  %vm550_vm14 = vcmask 523520   ;;  %vm547_vm15 = vcmask 253952   ;;  %vm610_vm1 = vcmask 130048  }
  0xf5   : > { %1225 = vmatpush.msra.mxu3 %v504_v56  ;;  %523 = vmatpush.msra.mxu0 %v504_v56  ;;  %v501_v59 = vld [vmem:[#allocation10] sm:$0xff]  ;;  %v534_v17 = vld [vmem:[#allocation3] sm:$0x1]  ;;  %v549_v24 = vld [vmem:[#allocation4] sm:$0x1] }
  0xf6   : > { %v566_v31 = vld [vmem:[#allocation2] sm:$0xff]  ;;  %v567_v34 = vld [vmem:[#allocation2 + $0x8] sm:$0xff]  ;;  %v568_v37 = vld [vmem:[#allocation2 + $0x10] sm:$0xff] }
  0xf7   : > { %1226 = vmatpush.msra.mxu3 %v503_v57  ;;  %524 = vmatpush.msra.mxu0 %v503_v57  ;;  %v569_v40 = vld [vmem:[#allocation2 + $0x18] sm:$0xff] }
  0xf9   : > { %1227 = vmatpush.msra.mxu3 %v502_v58  ;;  %525 = vmatpush.msra.mxu0 %v502_v58 }
  0xfb   : > { %1228 = vmatpush.msra.mxu3 %v501_v59  ;;  %526 = vmatpush.msra.mxu0 %v501_v59 }
  0xfc   : > { %1199 = vmatmul.msk.f32.vlgmr.msra.gmra.mxu3 %vm414_vm0, %v1941_v54  ;;  %1198 = vmatmul.msk.f32.vlgmr.msra.gmra.mxu0 %vm414_vm0, %v1938_v45 }
 0x179   : > { %v528_v60 = vpop.f32.mrf.mxu0 }
 0x17a   : > { %v535_v61 = vmul.f32 %v528_v60, %v528_v60 }
 0x17c   : > { %v537_v63 = vsel %vm414_vm0, %v535_v61, 0.0  ;;  %v551_v0 = vsel %vm550_vm14, %v535_v61, 0.0 }
 0x17f   : > { %v531_v62 = vpop.f32.mrf.mxu3 }
 0x180   : > { %v536_v1 = vmul.f32 %v531_v62, %v531_v62  ;;  %v1382_v2 = vpack.i.bf16 %v528_v60, %v531_v62 }
 0x182   : > { %v538_v3 = vsel %vm414_vm0, %v536_v1, 0.0  ;;  %v552_v4 = vsel %vm550_vm14, %v536_v1, 0.0  ;;  %1383 = vrot.lane.b32.xlu0 %v1382_v2, %s1714_s6 }
 0x183   : > { %v539_v5 = vadd.f32 %v538_v3, %v537_v63  ;;  %v553_v6 = vadd.f32 %v552_v4, %v551_v0 }
 0x185   : > { %v540_v7 = vrot.slane %v539_v5, 4  ;;  %v554_v8 = vrot.slane %v553_v6, 4 }
 0x187   : > { %v541_v9 = vadd.f32 %v540_v7, %v539_v5  ;;  %v555_v10 = vadd.f32 %v554_v8, %v553_v6 }
 0x189   : > { %v542_v11 = vrot.slane %v541_v9, 2  ;;  %v556_v12 = vrot.slane %v555_v10, 2 }
 0x18b   : > { %v543_v13 = vadd.f32 %v542_v11, %v541_v9  ;;  %v557_v14 = vadd.f32 %v556_v12, %v555_v10 }
 0x18d   : > { %v544_v15 = vrot.slane %v543_v13, 1  ;;  %v558_v16 = vrot.slane %v557_v14, 1 }
 0x18f   : > { %v545_v18 = vadd.f32 %v544_v15, %v543_v13  ;;  %v559_v19 = vadd.f32 %v558_v16, %v557_v14 }
 0x191   : > { %561 = vrot.lane.b32.xlu1 %v559_v19, %s1714_s6  ;;  %v546_v20 = vadd.f32 %v545_v18, %v534_v17 }
 0x193   : > { %548 = vst.msk [vmem:[#allocation3] sm:$0x1] %vm547_vm15, %v546_v20 }
 0x1a4   : > { %570 = vxpose.xlu0.b32.start [1/2] (short) (narrow) %v528_v60, 32 }
 0x1ac   : > { %571 = vxpose.xlu0.b32.end [2/2] (short) (narrow) %v531_v62, 32 }
 0x1f4   : > { %v1384_v21 = vpop.permute.xlu0 %1383 }
 0x1f5   : > { %v1385_v22 = vunpack.i.l.bf16 %v1384_v21  ;;  %v1386_v23 = vunpack.i.h.bf16 %v1384_v21 }
 0x1f7   : > { %637 = vmatpush.msra.mxu1 %v1385_v22  ;;  %1229 = vmatpush.msra.mxu2 %v1385_v22 }
 0x1f9   : > { %638 = vmatpush.msra.mxu1 %v1386_v23  ;;  %1230 = vmatpush.msra.mxu2 %v1386_v23 }
 0x203   : > { %v562_v25 = vpop.permute.xlu1 %561 }
 0x204   : > { %v564_v26 = vadd.f32 %v562_v25, %v549_v24 }
 0x206   : > { %565 = vst.msk [vmem:[#allocation4] sm:$0x1] %vm547_vm15, %v564_v26 }
 0x248   : > { %v586_v27 = vpop.trf.xlu0 }
 0x249   : > { %1200 = vmatmul.msk.f32.vlgmr.msra.gmra.mxu1 %vm610_vm1, %v586_v27 }
 0x250   : > { %v587_v28 = vpop.trf.xlu0 }
 0x251   : > { %1201 = vmatmul.msk.f32.gmra.mxu1 %vm610_vm1, %v587_v28 }
 0x258   : > { %v588_v29 = vpop.trf.xlu0 }
 0x259   : > { %1202 = vmatmul.msk.f32.vlgmr.msra.gmra.mxu2 %vm610_vm1, %v588_v29 }
 0x260   : > { %v589_v30 = vpop.trf.xlu0 }
 0x261   : > { %1203 = vmatmul.msk.f32.gmra.mxu2 %vm610_vm1, %v589_v30 }
 0x2c6   : > { %v640_v32 = vpop.f32.mrf.mxu1 }
 0x2c7   : > { %v652_v33 = vadd.f32 %v640_v32, %v566_v31 }
 0x2c9   : > { %656 = vst.msk [vmem:[#allocation2] sm:$0xff] %vm414_vm0, %v652_v33 }
 0x2ce   : > { %v643_v35 = vpop.f32.mrf.mxu1 }
 0x2cf   : > { %v653_v36 = vadd.f32 %v643_v35, %v567_v34 }
 0x2d1   : > { %657 = vst.msk [vmem:[#allocation2 + $0x8] sm:$0xff] %vm414_vm0, %v653_v36 }
 0x2dc   : > { %v646_v38 = vpop.f32.mrf.mxu2 }
 0x2dd   : > { %v654_v39 = vadd.f32 %v646_v38, %v568_v37 }
 0x2df   : > { %658 = vst.msk [vmem:[#allocation2 + $0x10] sm:$0xff] %vm414_vm0, %v654_v39 }
 0x2e4   : > { %v649_v41 = vpop.f32.mrf.mxu2 }
 0x2e5   : > { %v655_v42 = vadd.f32 %v649_v41, %v569_v40 }
 0x2e7   : > { %659 = vst.msk [vmem:[#allocation2 + $0x18] sm:$0xff] %vm414_vm0, %v655_v42 }
 0x2e8 PF: > { %p660_p8 = scmp.eq.s32.totalorder %s1688_s27, 1 }
 0x2e9   : > { %v665_v43 = vld [vmem:[#allocation3] sm:$0x1] (%p660_p8)  ;;  %v1715_v49 = vmov (%p660_p8), 0   ;;  %v694_v10 = vld [vmem:[#allocation4] sm:$0x1] (%p660_p8)  ;;  %v792_v36 = vld [vmem:[#allocation13] sm:$0xff] (%p660_p8) }
 0x2ea   : > { %664 = sbr.rel (!%p660_p8) target bundleno = 1363 (0x553), region = 84  ;;  %1390 = vrsqrt.f32 (%p660_p8), %v665_v43  ;;  %1388 = vset.pattern.permute.xlu1 (%p660_p8), %v1715_v49  ;;  %1389 = vset.pattern.permute.xlu2 (%p660_p8), %v1715_v49  ;;  %vm673_vm2 = vcmp.eq.f32.partialorder (%p660_p8), %v665_v43, inf  ;;  %v676_v52 = vand.u32 (%p660_p8), 2147483648, %v665_v43  ;;  %vm675_vm3 = vcmp.eq.f32.partialorder (%p660_p8), %v665_v43, 0.0  ;;  %v723_v2 = vld [vmem:[%s2059_s4] sm:$0x1] (%p660_p8) }
 0x2eb   : > { %vm702_vm8 = vcmp.eq.f32.partialorder (%p660_p8), %v694_v10, inf  ;;  %v705_v18 = vand.u32 (%p660_p8), 2147483648, %v694_v10  ;;  %vm704_vm9 = vcmp.eq.f32.partialorder (%p660_p8), %v694_v10, 0.0  ;;  %v757_v32 = vld [vmem:[#allocation2] sm:$0xff] (%p660_p8)  ;;  %v758_v39 = vld [vmem:[#allocation2 + $0x8] sm:$0xff] (%p660_p8) }
 0x2f0   : > { %v1391_v44 = vpop.eup %1390 }
 0x2f1   : > { %v667_v46 = vmul.f32 %v1391_v44, %v665_v43 }
 0x2f3   : > { %v668_v47 = vmul.f32 %v1391_v44, %v667_v46 }
 0x2f5   : > { %v669_v48 = vmul.f32 0.5, %v668_v47  ;;  %v759_v47 = vld [vmem:[#allocation2 + $0x10] sm:$0xff] }
 0x2f7   : > { %v670_v50 = vsub.f32 1.5, %v669_v48  ;;  %v760_v48 = vld [vmem:[#allocation2 + $0x18] sm:$0xff] }
 0x2f9   : > { %v671_v51 = vmul.f32 %v1391_v44, %v670_v50 }
 0x2fb   : > { %v672_v53 = vmul.f32 %v671_v51, %v665_v43 }
 0x2fd   : > { %v674_v55 = vsel %vm673_vm2, %v665_v43, %v672_v53  ;;  %v793_v43 = vld [vmem:[#allocation13 + $0x8] sm:$0xff] }
 0x2fe   : > { %v677_v56 = vsel %vm675_vm3, %v676_v52, %v674_v55  ;;  %v794_v55 = vld [vmem:[#allocation13 + $0x10] sm:$0xff] }
 0x2ff   : > { %v678_v57 = vmax.f32 %v677_v56, 1e-12 }
 0x301   : > { %1392 = vrcp.f32 %v678_v57  ;;  %v690_v60 = vand.u32 2147483648, %v678_v57  ;;  %vm684_vm4 = vweird.f32 %v678_v57  ;;  %v688_v62 = vand.u32 2147483647, %v678_v57 }
 0x302   : > { %1394 = vrsqrt.f32 %v694_v10 }
 0x303   : > { %v691_v0 = vor.u32 1.1754944e-38, %v690_v60  ;;  %vm689_vm7 = vcmp.eq.f32.partialorder %v688_v62, 8.507059e+37 }
 0x307   : > { %v1393_v58 = vpop.eup %1392 }
 0x308   : > { %v680_v59 = vmul.f32 %v1393_v58, %v678_v57  ;;  %vm685_vm5 = vweird.f32 %v1393_v58  ;;  %v1395_v11 = vpop.eup %1394 }
 0x309   : > { %vm686_vm6 = vmor %vm684_vm4, %vm685_vm5  ;;  %v696_v12 = vmul.f32 %v1395_v11, %v694_v10 }
 0x30a   : > { %v681_v61 = vsub.f32 1.0, %v680_v59  ;;  %v795_v59 = vld [vmem:[#allocation13 + $0x18] sm:$0xff] }
 0x30b   : > { %v697_v13 = vmul.f32 %v1395_v11, %v696_v12 }
 0x30c   : > { %v682_v63 = vmul.f32 %v1393_v58, %v681_v61 }
 0x30d   : > { %v698_v14 = vmul.f32 0.5, %v697_v13 }
 0x30e   : > { %v683_v1 = vadd.f32 %v1393_v58, %v682_v63 }
 0x30f   : > { %v699_v15 = vsub.f32 1.5, %v698_v14 }
 0x310   : > { %v687_v3 = vsel %vm686_vm6, %v1393_v58, %v683_v1 }
 0x311   : > { %v692_v4 = vsel %vm689_vm7, %v691_v0, %v687_v3  ;;  %v700_v16 = vmul.f32 %v1395_v11, %v699_v15 }
 0x312   : > { %v724_v5 = vmul.f32 %v723_v2, %v692_v4 }
 0x313   : > { %v701_v17 = vmul.f32 %v700_v16, %v694_v10 }
 0x314   : > { %725 = vxpose.xlu0.b32.start.end [1/1] (short) (narrow) %v724_v5, 32 }
 0x315   : > { %v703_v19 = vsel %vm702_vm8, %v694_v10, %v701_v17 }
 0x316   : > { %v706_v20 = vsel %vm704_vm9, %v705_v18, %v703_v19 }
 0x317   : > { %v707_v21 = vmax.f32 %v706_v20, 1e-12 }
 0x319   : > { %1396 = vrcp.f32 %v707_v21  ;;  %vm713_vm10 = vweird.f32 %v707_v21  ;;  %v719_v26 = vand.u32 2147483648, %v707_v21  ;;  %v717_v28 = vand.u32 2147483647, %v707_v21 }
 0x31b   : > { %v720_v29 = vor.u32 1.1754944e-38, %v719_v26  ;;  %vm718_vm13 = vcmp.eq.f32.partialorder %v717_v28, 8.507059e+37 }
 0x31f   : > { %v1397_v22 = vpop.eup %1396 }
 0x320   : > { %v709_v23 = vmul.f32 %v1397_v22, %v707_v21  ;;  %vm714_vm11 = vweird.f32 %v1397_v22 }
 0x321   : > { %vm715_vm12 = vmor %vm713_vm10, %vm714_vm11 }
 0x322   : > { %v710_v24 = vsub.f32 1.0, %v709_v23 }
 0x324   : > { %v711_v25 = vmul.f32 %v1397_v22, %v710_v24 }
 0x326   : > { %v712_v27 = vadd.f32 %v1397_v22, %v711_v25 }
 0x328   : > { %v716_v30 = vsel %vm715_vm12, %v1397_v22, %v712_v27 }
 0x329   : > { %v721_v31 = vsel %vm718_vm13, %v720_v29, %v716_v30 }
 0x32a   : > { %v786_v33 = vperm.slane %v721_v31, 0 }
 0x37b   : > { %1387 = vset.pattern.permute.xlu0 %v1715_v49 }
 0x3b8   : > { %v741_v6 = vpop.trf.xlu0 }
 0x3b9   : > { %763 = vperm.xlu0 %1387, %v741_v6  }
 0x3c0   : > { %v742_v7 = vpop.trf.xlu0 }
 0x3c1   : > { %768 = vperm.xlu1 %1388, %v742_v7  }
 0x3c8   : > { %v743_v8 = vpop.trf.xlu0 }
 0x3c9   : > { %773 = vperm.xlu1 %1388, %v743_v8  }
 0x3d0   : > { %v744_v9 = vpop.trf.xlu0 }
 0x3d1   : > { %778 = vperm.xlu2 %1389, %v744_v9  }
 0x42b   : > { %v764_v34 = vpop.permute.xlu0 %763  ;;  %v779_v49 = vpop.permute.xlu2 %778 }
 0x42c   : > { %v781_v35 = vmul.f32 %v764_v34, %v757_v32  ;;  %v784_v53 = vmul.f32 %v779_v49, %v760_v48 }
 0x42e   : > { %v788_v37 = vmul.f32 %v786_v33, %v781_v35  ;;  %v791_v57 = vmul.f32 %v786_v33, %v784_v53 }
 0x430   : > { %v796_v38 = vadd.f32 %v792_v36, %v788_v37  ;;  %v799_v61 = vadd.f32 %v795_v59, %v791_v57 }
 0x432   : > { %v800_v40 = vsel %vm414_vm0, %v796_v38, -inf  ;;  %v809_v62 = vsel %vm414_vm0, %v799_v61, -inf }
 0x433   : > { %v769_v41 = vpop.permute.xlu1 %768  ;;  %801 = vmax.xlane.f32.xlu2 %v800_v40 }
 0x434   : > { %v782_v42 = vmul.f32 %v769_v41, %v758_v39 }
 0x436   : > { %v789_v44 = vmul.f32 %v786_v33, %v782_v42 }
 0x438   : > { %v797_v46 = vadd.f32 %v793_v43, %v789_v44 }
 0x43a   : > { %v803_v50 = vsel %vm414_vm0, %v797_v46, -inf }
 0x43b   : > { %804 = vmax.xlane.f32.xlu1 %v803_v50  ;;  %v774_v51 = vpop.permute.xlu1 %773 }
 0x43c   : > { %v783_v52 = vmul.f32 %v774_v51, %v759_v47 }
 0x43e   : > { %v790_v56 = vmul.f32 %v786_v33, %v783_v52 }
 0x440   : > { %v798_v58 = vadd.f32 %v794_v55, %v790_v56 }
 0x442   : > { %v806_v60 = vsel %vm414_vm0, %v798_v58, -inf }
 0x443   : > { %807 = vmax.xlane.f32.xlu2 %v806_v60 }
 0x44b   : > { %810 = vmax.xlane.f32.xlu2 %v809_v62 }
 0x4a6   : > { %v802_v63 = vpop.xlane.xlu2 %801 }
 0x4a7   : > { %v812_v0 = vsub.f32 %v796_v38, %v802_v63 }
 0x4a9   : > { %v816_v1 = vmul.f32 1.442695, %v812_v0 }
 0x4ab   : > { %1398 = vpow2.f32 %v816_v1 }
 0x4ae   : > { %v805_v2 = vpop.xlane.xlu1 %804 }
 0x4af   : > { %v813_v3 = vsub.f32 %v797_v46, %v805_v2 }
 0x4b1   : > { %v1399_v4 = vpop.eup %1398  ;;  %v818_v5 = vmul.f32 1.442695, %v813_v3 }
 0x4b2   : > { %v824_v6 = vsel %vm414_vm0, %v1399_v4, 0.0 }
 0x4b3   : > { %1400 = vpow2.f32 %v818_v5  ;;  %825 = vadd.xlane.f32.xlu1 %v824_v6 }
 0x4b6   : > { %v808_v7 = vpop.xlane.xlu2 %807 }
 0x4b7   : > { %v814_v8 = vsub.f32 %v798_v58, %v808_v7 }
 0x4b9   : > { %v1401_v9 = vpop.eup %1400  ;;  %v820_v10 = vmul.f32 1.442695, %v814_v8 }
 0x4ba   : > { %v827_v11 = vsel %vm414_vm0, %v1401_v9, 0.0 }
 0x4bb   : > { %1402 = vpow2.f32 %v820_v10  ;;  %828 = vadd.xlane.f32.xlu2 %v827_v11 }
 0x4be   : > { %v811_v12 = vpop.xlane.xlu2 %810 }
 0x4bf   : > { %v815_v13 = vsub.f32 %v799_v61, %v811_v12 }
 0x4c1   : > { %v1976_v14 = vpop.eup %1402  ;;  %v822_v15 = vmul.f32 1.442695, %v815_v13 }
 0x4c2   : > { %v830_v16 = vsel %vm414_vm0, %v1976_v14, 0.0 }
 0x4c3   : > { %1404 = vpow2.f32 %v822_v15  ;;  %831 = vadd.xlane.f32.xlu1 %v830_v16 }
 0x4c9   : > { %v1980_v17 = vpop.eup %1404 }
 0x4ca   : > { %v833_v18 = vsel %vm414_vm0, %v1980_v17, 0.0 }
 0x4cb   : > { %834 = vadd.xlane.f32.xlu2 %v833_v18 }
 0x526   : > { %v826_v19 = vpop.xlane.xlu1 %825 }
 0x527   : > { %1406 = vrcp.f32 %v826_v19  ;;  %v847_v24 = vand.u32 2147483648, %v826_v19  ;;  %v845_v26 = vand.u32 2147483647, %v826_v19  ;;  %vm841_vm15 = vweird.f32 %v826_v19 }
 0x529   : > { %v848_v29 = vor.u32 1.1754944e-38, %v847_v24  ;;  %vm846_vm2 = vcmp.eq.f32.partialorder %v845_v26, 8.507059e+37 }
 0x52d   : > { %v1407_v20 = vpop.eup %1406 }
 0x52e   : > { %v837_v21 = vmul.f32 %v1407_v20, %v826_v19  ;;  %v829_v22 = vpop.xlane.xlu2 %828  ;;  %vm842_vm14 = vweird.f32 %v1407_v20 }
 0x52f   : > { %1408 = vrcp.f32 %v829_v22  ;;  %vm843_vm1 = vmor %vm841_vm15, %vm842_vm14  ;;  %v862_v36 = vand.u32 2147483648, %v829_v22  ;;  %v860_v38 = vand.u32 2147483647, %v829_v22  ;;  %vm856_vm4 = vweird.f32 %v829_v22 }
 0x530   : > { %v838_v23 = vsub.f32 1.0, %v837_v21 }
 0x531   : > { %v863_v41 = vor.u32 1.1754944e-38, %v862_v36  ;;  %vm861_vm6 = vcmp.eq.f32.partialorder %v860_v38, 8.507059e+37 }
 0x532   : > { %v839_v25 = vmul.f32 %v1407_v20, %v838_v23 }
 0x534   : > { %v840_v27 = vadd.f32 %v1407_v20, %v839_v25 }
 0x535   : > { %v1409_v28 = vpop.eup %1408 }
 0x536   : > { %v844_v30 = vsel %vm843_vm1, %v1407_v20, %v840_v27  ;;  %v852_v31 = vmul.f32 %v1409_v28, %v829_v22  ;;  %v832_v32 = vpop.xlane.xlu1 %831  ;;  %vm857_vm3 = vweird.f32 %v1409_v28 }
 0x537   : > { %v849_v33 = vsel %vm846_vm2, %v848_v29, %v844_v30  ;;  %1410 = vrcp.f32 %v832_v32  ;;  %vm858_vm5 = vmor %vm856_vm4, %vm857_vm3  ;;  %v877_v49 = vand.u32 2147483648, %v832_v32  ;;  %v875_v51 = vand.u32 2147483647, %v832_v32 }
 0x538   : > { %v850_v34 = vmul.f32 %v1399_v4, %v849_v33  ;;  %v853_v35 = vsub.f32 1.0, %v852_v31  ;;  %vm871_vm8 = vweird.f32 %v832_v32 }
 0x539   : > { %v878_v55 = vor.u32 1.1754944e-38, %v877_v49  ;;  %vm876_vm10 = vcmp.eq.f32.partialorder %v875_v51, 8.507059e+37 }
 0x53a   : > { %896 = vst.msk [vmem:[#allocation2] sm:$0xff] %vm414_vm0, %v850_v34  ;;  %v854_v37 = vmul.f32 %v1409_v28, %v853_v35 }
 0x53c   : > { %v855_v39 = vadd.f32 %v1409_v28, %v854_v37 }
 0x53d   : > { %v1411_v40 = vpop.eup %1410 }
 0x53e   : > { %v859_v42 = vsel %vm858_vm5, %v1409_v28, %v855_v39  ;;  %v867_v43 = vmul.f32 %v1411_v40, %v832_v32  ;;  %v835_v44 = vpop.xlane.xlu2 %834  ;;  %vm872_vm7 = vweird.f32 %v1411_v40 }
 0x53f   : > { %v864_v46 = vsel %vm861_vm6, %v863_v41, %v859_v42  ;;  %1412 = vrcp.f32 %v835_v44  ;;  %vm873_vm9 = vmor %vm871_vm8, %vm872_vm7  ;;  %v892_v61 = vand.u32 2147483648, %v835_v44  ;;  %v890_v63 = vand.u32 2147483647, %v835_v44 }
 0x540   : > { %v865_v47 = vmul.f32 %v1401_v9, %v864_v46  ;;  %v868_v48 = vsub.f32 1.0, %v867_v43  ;;  %vm886_vm12 = vweird.f32 %v835_v44 }
 0x541   : > { %v893_v1 = vor.u32 1.1754944e-38, %v892_v61  ;;  %vm891_vm14 = vcmp.eq.f32.partialorder %v890_v63, 8.507059e+37 }
 0x542   : > { %897 = vst.msk [vmem:[#allocation2 + $0x8] sm:$0xff] %vm414_vm0, %v865_v47  ;;  %v869_v50 = vmul.f32 %v1411_v40, %v868_v48 }
 0x544   : > { %v870_v52 = vadd.f32 %v1411_v40, %v869_v50 }
 0x545   : > { %v1413_v53 = vpop.eup %1412 }
 0x546   : > { %v874_v56 = vsel %vm873_vm9, %v1411_v40, %v870_v52  ;;  %v882_v57 = vmul.f32 %v1413_v53, %v835_v44  ;;  %vm887_vm11 = vweird.f32 %v1413_v53 }
 0x547   : > { %v879_v58 = vsel %vm876_vm10, %v878_v55, %v874_v56  ;;  %vm888_vm13 = vmor %vm886_vm12, %vm887_vm11 }
 0x548   : > { %v880_v59 = vmul.f32 %v1976_v14, %v879_v58  ;;  %v883_v60 = vsub.f32 1.0, %v882_v57 }
 0x54a   : > { %898 = vst.msk [vmem:[#allocation2 + $0x10] sm:$0xff] %vm414_vm0, %v880_v59  ;;  %v884_v62 = vmul.f32 %v1413_v53, %v883_v60 }
 0x54c   : > { %v885_v0 = vadd.f32 %v1413_v53, %v884_v62 }
 0x54e   : > { %v889_v2 = vsel %vm888_vm13, %v1413_v53, %v885_v0 }
 0x54f   : > { %v894_v3 = vsel %vm891_vm14, %v893_v1, %v889_v2 }
 0x550   : > { %v895_v4 = vmul.f32 %v1980_v17, %v894_v3 }
 0x552   : > { %899 = vst.msk [vmem:[#allocation2 + $0x18] sm:$0xff] %vm414_vm0, %v895_v4 }
 0x553 PF: > { %p1205_p9 = scmp.ne.s32.totalorder %s1688_s27, 1 }
 0x555   : > { %902 = sbr.rel (%p1205_p9) target bundleno = 1777 (0x6f1), region = 88 }
 0x55a   : > { %v906_v5 = vld [vmem:[#allocation11 + $0x18] sm:$0xff]  ;;  %v905_v6 = vld [vmem:[#allocation11 + $0x10] sm:$0xff]  ;;  %v904_v8 = vld [vmem:[#allocation11 + $0x8] sm:$0xff] }
 0x55b   : > { %925 = vmatpush.msra.mxu0 %v906_v5  ;;  %v939_v7 = vld [vmem:[#allocation2 + $0x18] sm:$0xff]  ;;  %v938_v9 = vld [vmem:[#allocation2 + $0x10] sm:$0xff]  ;;  %v903_v10 = vld [vmem:[#allocation11] sm:$0xff] }
 0x55c   : > { %1208 = vmatpush.xpose.msk.msra.mxu1 %vm414_vm0, %v939_v7  ;;  %1231 = vmatpush.xpose.msk.msra.mxu3 %vm414_vm0, %v939_v7  ;;  %v937_v11 = vld [vmem:[#allocation2 + $0x8] sm:$0xff]  ;;  %v936_v12 = vld [vmem:[#allocation2] sm:$0xff]  ;;  %v983_v14 = vld [vmem:[#allocation14 + $0x10] sm:$0xff] }
 0x55d   : > { %926 = vmatpush.msra.mxu0 %v905_v6  ;;  %v984_v13 = vld [vmem:[#allocation14 + $0x18] sm:$0xff]  ;;  %v982_v15 = vld [vmem:[#allocation14 + $0x8] sm:$0xff]  ;;  %v981_v17 = vld [vmem:[#allocation14] sm:$0xff] }
 0x55e   : > { %1003 = vmatpush.msra.mxu2 %v984_v13 }
 0x55f   : > { %927 = vmatpush.msra.mxu0 %v904_v8 }
 0x560   : > { %1209 = vmatpush.xpose.msk.msra.mxu1 %vm414_vm0, %v938_v9  ;;  %1232 = vmatpush.xpose.msk.msra.mxu3 %vm414_vm0, %v938_v9 }
 0x561   : > { %928 = vmatpush.msra.mxu0 %v903_v10  ;;  %1004 = vmatpush.msra.mxu2 %v983_v14 }
 0x562   : > { %1206 = vmatmul.msk.f32.vlgmr.msra.gmra.mxu0 %vm414_vm0, %v1938_v45 }
 0x563   : > { %1005 = vmatpush.msra.mxu2 %v982_v15 }
 0x564   : > { %1210 = vmatpush.xpose.msk.msra.mxu1 %vm414_vm0, %v937_v11  ;;  %1233 = vmatpush.xpose.msk.msra.mxu3 %vm414_vm0, %v937_v11 }
 0x565   : > { %1006 = vmatpush.msra.mxu2 %v981_v17 }
 0x568   : > { %1211 = vmatpush.xpose.msk.msra.mxu1 %vm414_vm0, %v936_v12  ;;  %1234 = vmatpush.xpose.msk.msra.mxu3 %vm414_vm0, %v936_v12 }
 0x56a   : > { %1207 = vmatmul.msk.f32.gmra.mxu0 %vm414_vm0, %v1941_v54 }
 0x5df   : > { %v930_v45 = vpop.f32.mrf.mxu0 }
 0x5e0   : > { %1212 = vmatmul.msk.f32.vlgmr.msra.gmra.mxu1 %vm414_vm0, %v930_v45 }
 0x5e7   : > { %v933_v16 = vpop.f32.mrf.mxu0 }
 0x5e8   : > { %1213 = vmatmul.msk.f32.vlgmr.msra.gmra.mxu3 %vm414_vm0, %v933_v16 }
 0x65d   : > { %v975_v18 = vpop.f32.mrf.mxu1 }
 0x65e   : > { %1214 = vmatmul.msk.f32.vlgmr.msra.gmra.mxu2 %vm414_vm0, %v975_v18 }
 0x66b   : > { %v978_v54 = vpop.f32.mrf.mxu3 }
 0x66c   : > { %1215 = vmatmul.msk.f32.gmra.mxu2 %vm414_vm0, %v978_v54 }
 0x6e1   : > { %v1008_v19 = vpop.f32.mrf.mxu2 }
 0x6e2   : > { %1014 = vst.msk [vmem:[%s1945_s5] sm:$0xff] %vm414_vm0, %v1008_v19 }
 0x6ef   : > { %v1011_v20 = vpop.f32.mrf.mxu2 }
 0x6f0   : > { %1015 = vst.msk [vmem:[%s1945_s5 + $0x8] sm:$0xff] %vm414_vm0, %v1011_v20 }
 0x6f1 PF: > { %s1224_s27 = sshll.u32 %s1692_s28, 4  ;;  %s1032_s20 = sshll.u32 %s1945_s5, 4  ;;  %s1033_s20 = int_to_ptr.vmem [resolvable:$true] %s1032_s20 }
 0x6f2   : > { %s1031_s21 = scalar_lea.hbm %s2062_s7, %s1224_s27  ;;  %s1017_s22 = scalar_lea.sflag [#allocation7], %s1909_s23 }
 0x6f3   : > { %s1034_s17 = sshll.u32 %s1031_s21, 4  ;;  %s1614_s28 = scalar_lea.hbm %s2062_s7, 32  ;;  %s1035_s17 = int_to_ptr.hbm [resolvable:$true] %s1034_s17 }
 0x6f4   : > { %s1608_s12 = sshra.s32 %s1035_s17, 4  ;;  %s1609_s12 = int_to_ptr.hbm [resolvable:$true] %s1608_s12 }
 0x6f5   : > { %s1610_s19 = scalar_lea.hbm %s1609_s12, 16  ;;  %p1615_p13 = scmp.lt.s32.totalorder %s1609_s12, %s2062_s7 }
 0x6f6   : > { %p1611_p10 = scmp.ne.s32.totalorder %s1609_s12, %s1610_s19  ;;  %p1616_p0 = scmp.lt.s32.totalorder %s1614_s28, %s1610_s19 }
 0x6f8   : > { %p1612_p11 = pnand %p1611_p10, %p1882_p2  ;;  %p1617_p5 = por %p1616_p0, %p1615_p13 }
 0x6fa   : > { %p1613_p12 = pneg %p1612_p11 }
 0x6fc   : > { %p1618_p6 = pnand %p1617_p5, %p1613_p12 }
 0x6fe   : > { %1621 = shalt.err (!%p1618_p6)
}
 0x6ff   : > { %s1716_s23 = smov 128   ;;  %s1717_s3 = smov 8  }
 0x700   : > { %1257 = dma.vmem_to_hbm [thread:$0]  (%p1882_p2), %s1033_s20, 256, %s1035_s17, %s1017_s22, %s1716_s23, %s1716_s23, %s1717_s3  }
 0x701 PF: > { %p1294_p7 = scmp.ge.s32.totalorder %s1704_s8, 2  ;;  %s1049_s5 = sand.u32 1, %s1676_s24  }
 0x702   : > { %s1050_s6 = scalar_lea.sflag [#allocation7], %s1049_s5 }
 0x703   : > { %p1280_p3 = pnand %p1294_p7, %p1886_p4 }
 0x705   : > { %p1281_p1 = pneg %p1280_p3 }
 0x707   : > { %1671 = dma.done.wait (%p1281_p1), %s1050_s6, 256  }
 0x708   : > { %1673 = vsyncadd (%p1281_p1), %s1050_s6, 4294967040  ;;  %s26_s8 = sadd.s32 1, %s1704_s8   ;;  %s2091_s27 = sld [smem:[#allocation22_spill]] }
 0x709   : > { %p23_p8 = scmp.ge.s32.totalorder %s26_s8, 6   ;;  %s2092_s29 = sld [smem:[#allocation23_spill]] }
 0x70a   : > { %s2093_s11 = sld [smem:[#allocation24_spill]]  ;;  %s2094_s24 = smov %s1680_s25 }
 0x70b   : > { %s2095_s25 = smov %s1684_s26  ;;  %s2096_s26 = smov %s1895_s15 }
 0x70c   : > { %s2097_s28 = smov %s1700_s30  ;;  %25 = sbr.rel (!%p23_p8) target bundleno = 16 (0x10), region = 129 }
 0x710   : > { %s2098_s30 = smov %s2093_s11 }
 0x711   :  { %1056 = vsyncpa [#allocation6], 1 }
 0x712   :  { %1058 = vsyncpa [#allocation6 + $0x1], 1 }
 0x713   :  { %1059 = vsyncpa [#allocation9], 1 }
 0x714   :  { %1060 = vsyncpa [#allocation12], 1 }
 0x715   :  { %1061 = vsyncpa [#allocation15], 1 }
 0x716   :  { %1062 = vsyncpa [#allocation7], 1 }
 0x717   :  { %1064 = vsyncpa [#allocation7 + $0x1], 1 }

// kernel: tpu_custom_call.1
= control target key start
LH: loop header
LB: loop body
LE: loop exit
PB: predicated region body
PF: predicated region fallthrough
CT: control target
= control target key end

     0   :  { %s2055_s0 = inlined_call_operand.hbm [shape: f32[2,16,32], index: 0, kind: input, shape index: {}]   ;;  %s2056_s1 = inlined_call_operand.hbm [shape: f32[1,32], index: 1, kind: input, shape index: {}]   ;;  %s2057_s2 = inlined_call_operand.hbm [shape: f32[32,64], index: 2, kind: input, shape index: {}]   ;;  %s2058_s3 = inlined_call_operand.hbm [shape: f32[32,32], index: 3, kind: input, shape index: {}]   ;;  %s2059_s4 = inlined_call_operand.vmem [shape: f32[1,32], index: 4, kind: input, shape index: {}]   ;;  %s2060_s5 = inlined_call_operand.hbm [shape: f32[32,32], index: 5, kind: input, shape index: {}]   ;;  %s2061_s6 = inlined_call_operand.hbm [shape: f32[32,32], index: 6, kind: input, shape index: {}]   ;;  %s2062_s7 = inlined_call_operand.hbm [shape: f32[2,16,32], index: 7, kind: output, shape index: {}]  }
   0x1   :  { %2068 = sst [smem:[#allocation25_spill]] %s2056_s1 }
   0x2   :  { %2069 = sst [smem:[#allocation26_spill]] %s2057_s2 }
   0x3   :  { %2070 = sst [smem:[#allocation27_spill]] %s2058_s3 }
   0x4   :  { %2071 = sst [smem:[#allocation28_spill]] %s2060_s5 }
   0x5   :  { %2072 = sst [smem:[#allocation29_spill]] %s2061_s6 }
   0x6   :  { %12 = vsyncpa [#allocation6], 0 }
   0x7   :  { %14 = vsyncpa [#allocation6 + $0x1], 0 }
   0x8   :  { %15 = vsyncpa [#allocation9], 0 }
   0x9   :  { %16 = vsyncpa [#allocation12], 0 }
   0xa   :  { %17 = vsyncpa [#allocation15], 0 }
   0xb   :  { %18 = vsyncpa [#allocation7], 0 }
   0xc   :  { %20 = vsyncpa [#allocation7 + $0x1], 0  ;;  %s1758_s24 = smov 0   ;;  %s1760_s25 = smov 0  }
   0xd   :  { %s1762_s26 = smov 0   ;;  %s1764_s27 = smov 0  }
   0xe   :  { %s1766_s28 = smov 0   ;;  %s1768_s29 = smov 0  }
   0xf   :  { %s1770_s30 = smov 0   ;;  %s1772_s8 = smov 0  }
  0x10 LB: > { %2073 = sst [smem:[#allocation22_spill]] %s1696_s29  ;;  %s2063_s9 = sadd.s32 4294967295, %s1704_s8   ;;  %s1704_s8 = sphi %s1772_s8, %s26_s8   ;;  %s1700_s30 = sphi %s1770_s30, %s2098_s30   ;;  %s1696_s29 = sphi %s1768_s29, %s2092_s29   ;;  %s1692_s28 = sphi %s1766_s28, %s2097_s28   ;;  %s1688_s27 = sphi %s1764_s27, %s2091_s27   ;;  %s1684_s26 = sphi %s1762_s26, %s2096_s26   ;;  %s1680_s25 = sphi %s1760_s25, %s2095_s25   ;;  %s1676_s24 = sphi %s1758_s24, %s2094_s24  }
  0x11   : > { %p1178_p0 = scmp.ge.s32.totalorder %s1704_s8, 1  ;;  %p1802_p1 = scmp.eq.s32.totalorder %s2063_s9, 0 }
  0x12   : > { %p234_p2 = scmp.lt.s32.totalorder %s1704_s8, 5  ;;  %s2075_s1 = sld [smem:[#allocation25_spill]] }
  0x13   : > { %s1706_s15 = smov [#allocation8]   ;;  %s2078_s3 = sld [smem:[#allocation27_spill]] }
  0x14   : > { %p1810_p3 = pnand %p1178_p0, %p234_p2  ;;  %s248_s16 = sshll.u32 %s1706_s15, 4  ;;  %s249_s16 = int_to_ptr.vmem [resolvable:$true] %s248_s16 }
  0x15   : > { %s1707_s21 = smov [#allocation11]   ;;  %s2079_s2 = sld [smem:[#allocation26_spill]] }
  0x16   : > { %p1259_p4 = pneg %p1810_p3  ;;  %s273_s22 = sshll.u32 %s1707_s21, 4  ;;  %s274_s22 = int_to_ptr.vmem [resolvable:$true] %s273_s22 }
  0x17   : > { %s2064_s15 = smov 128   ;;  %s2065_s9 = smov 8  }
  0x18   : > { %s246_s13 = sshll.u32 %s2075_s1, 4  ;;  %p1818_p5 = pnand %p1259_p4, %p1802_p1  ;;  %s247_s13 = int_to_ptr.hbm [resolvable:$true] %s246_s13 }
  0x19   : > { %s271_s20 = sshll.u32 %s2078_s3, 4  ;;  %s2080_s5 = sld [smem:[#allocation28_spill]]  ;;  %s272_s20 = int_to_ptr.hbm [resolvable:$true] %s271_s20 }
  0x1a   : > { %1262 = dma.hbm_to_vmem [thread:$0]  (!%p1818_p5), %s247_s13, 16, %s249_s16, [#allocation9]  }
  0x1b   : > { %s257_s12 = sshll.u32 %s2079_s2, 4  ;;  %s1710_s16 = smov [#allocation10]   ;;  %s258_s12 = int_to_ptr.hbm [resolvable:$true] %s257_s12 }
  0x1c   : > { %1268 = dma.hbm_to_vmem [thread:$0]  (!%p1818_p5), %s272_s20, 512, %s274_s22, [#allocation12], %s2064_s15, %s2064_s15, %s2065_s9  }
  0x1d   : > { %s259_s21 = sshll.u32 %s1710_s16, 4  ;;  %s1711_s20 = smov [#allocation13]   ;;  %s260_s21 = int_to_ptr.vmem [resolvable:$true] %s259_s21 }
  0x1e   : > { %1265 = dma.hbm_to_vmem [thread:$0]  (!%p1818_p5), %s258_s12, 512, %s260_s21, [#allocation9], %s2064_s15, %s2064_s15, %s2065_s9  }
  0x1f   : > { %s288_s13 = sshll.u32 %s2080_s5, 4  ;;  %s290_s22 = sshll.u32 %s1711_s20, 4  ;;  %s289_s13 = int_to_ptr.hbm [resolvable:$true] %s288_s13  ;;  %s291_s22 = int_to_ptr.vmem [resolvable:$true] %s290_s22 }
  0x20   : > { %s2081_s6 = sld [smem:[#allocation29_spill]]  ;;  %s1712_s12 = smov [#allocation14]  }
  0x21   : > { %1271 = dma.hbm_to_vmem [thread:$0]  (!%p1818_p5), %s289_s13, 512, %s291_s22, [#allocation12], %s2064_s15, %s2064_s15, %s2065_s9  }
  0x22   : > { %s304_s19 = sshll.u32 %s1712_s12, 4  ;;  %s1177_s16 = sadd.s32 4294967294, %s1704_s8   ;;  %s305_s19 = int_to_ptr.vmem [resolvable:$true] %s304_s19 }
  0x23   : > { %s41_s21 = sadd.s32 1, %s1696_s29  ;;  %s45_s20 = sadd.s32 1, %s1700_s30 }
  0x24   : > { %p43_p6 = scmp.ge.s32.totalorder %s41_s21, 2  ;;  %s54_s23 = sadd.s32 1, %s1684_s26 }
  0x25   : > { %p61_p7 = scmp.ne.s32.totalorder %s1684_s26, %s1680_s25  ;;  %p62_p8 = scmp.eq.s32.totalorder %s1704_s8, 0 }
  0x26   : > { %s302_s18 = sshll.u32 %s2081_s6, 4  ;;  %s2100_s21 = smov (%p43_p6, %s41_s21), 0  ;;  %s303_s18 = int_to_ptr.hbm [resolvable:$true] %s302_s18 }
  0x27   : > { %1274 = dma.hbm_to_vmem [thread:$0]  (!%p1818_p5), %s303_s18, 512, %s305_s19, [#allocation15], %s2064_s15, %s2064_s15, %s2065_s9  }
  0x28   : > { %2082 = sst [smem:[#allocation23_spill]] %s2100_s21  ;;  %s2102_s20 = smov (!%p43_p6, %s45_s20), %s1700_s30 }
  0x29   : > { %p1866_p9 = por %p62_p8, %p61_p7  ;;  %p67_p10 = scmp.ne.s32.totalorder %s1680_s25, %s1676_s24 }
  0x2a   : > { %p47_p11 = scmp.ge.s32.totalorder %s2102_s20, 2  ;;  %s2084_s13 = sadd.s32 4294967295, %s1704_s8  }
  0x2b   : > { %p221_p12 = scmp.eq.s32.totalorder %s2084_s13, 3  ;;  %p1876_p13 = por %p1802_p1, %p67_p10 }
  0x2c   : > { %p227_p0 = scmp.eq.s32.totalorder %s1177_s16, 3  ;;  %s2104_s20 = smov (%p47_p11, %s2102_s20), 0 }
  0x2d   : > { %2086 = sst [smem:[#allocation24_spill]] %s2104_s20  ;;  %p1882_p2 = por %p221_p12, %p61_p7 }
  0x2e   : > { %p1886_p4 = por %p227_p0, %p67_p10  ;;  %s49_s12 = ssub.s32 %s1700_s30, %s2104_s20 }
  0x2f   : > { %p1288_p5 = scmp.lt.s32.totalorder %s1704_s8, 4  ;;  %p52_p6 = scmp.eq.s32.totalorder %s49_s12, 0 }
  0x30   : > { %s318_s19 = sand.u32 1, %s1684_s26   ;;  %s1221_s16 = sshll.u32 %s1700_s30, 4 }
  0x31   : > { %s1185_s13 = sshll.u32 %s318_s19, 4  ;;  %s329_s2 = scalar_lea.hbm %s2055_s0, %s1221_s16 }
  0x32   : > { %s1895_s15 = scalar_select %p52_p6, %s1684_s26, %s54_s23  }
  0x33   : > { %s322_s3 = scalar_lea.vmem [#allocation5], %s1185_s13  ;;  %s330_s6 = sshll.u32 %s329_s2, 4  ;;  %s331_s6 = int_to_ptr.hbm [resolvable:$true] %s330_s6 }
  0x34   : > { %s332_s5 = sshll.u32 %s322_s3, 4  ;;  %p1276_p7 = pnand %p1288_p5, %p1866_p9  ;;  %s333_s5 = int_to_ptr.vmem [resolvable:$true] %s332_s5 }
  0x35   : > { %s319_s21 = scalar_lea.sflag [#allocation6], %s318_s19  ;;  %s2089_s20 = smov 8  }
  0x36   : > { %s2090_s29 = smov 128   ;;  %344 = sbr.rel (%p1810_p3) target bundleno = 1793 (0x701), region = 48 }
  0x37   : > { %1278 = dma.hbm_to_vmem [thread:$0]  (!%p1276_p7), %s331_s6, 256, %s333_s5, %s319_s21, %s2090_s29, %s2090_s29, %s2089_s20  }
  0x38   : > { %s1909_s23 = sand.u32 (!%p1810_p3), 1, %s1680_s25  }
  0x39   : > { %s1189_s1 = sshll.u32 (!%p1810_p3), %s1909_s23, 4  ;;  %s347_s2 = scalar_lea.sflag (!%p1810_p3), [#allocation6], %s1909_s23 }
  0x3a   : > { %s350_s3 = scalar_lea.vmem (!%p1810_p3), [#allocation5], %s1189_s1 }
  0x3b   : > { %1655 = dma.done.wait (%p1876_p13), %s347_s2, 256  }
  0x3c   : > { %1657 = vsyncadd (%p1876_p13), %s347_s2, 4294967040 }
  0x3d   : > { %1659 = dma.done.wait (%p1802_p1), [#allocation9], 528  }
  0x3e   : > { %1661 = vsyncadd (%p1802_p1), [#allocation9], 4294966768 }
  0x3f   : > { %1663 = dma.done.wait (%p1802_p1), [#allocation12], 1024  }
  0x40   : > { %1665 = vsyncadd (%p1802_p1), [#allocation12], 4294966272 }
  0x41   : > { %1667 = dma.done.wait (%p1802_p1), [#allocation15], 512  }
  0x42   : > { %1669 = vsyncadd (%p1802_p1), [#allocation15], 4294966784  ;;  %v410_v0 = vld [vmem:[%s350_s3] sm:$0xff]  ;;  %vm414_vm0 = vcmask 261120   ;;  %v1931_v2 = vld [vmem:[%s350_s3 + $0x8] sm:$0xff]  ;;  %p485_p3 = scmp.eq.s32.totalorder %s1688_s27, 0 }
  0x43   : > { %v412_v1 = vmul.f32 %v410_v0, %v410_v0  ;;  %v413_v4 = vmul.f32 %v1931_v2, %v1931_v2  ;;  %v1373_v39 = vld [vmem:[#allocation8] ss:$0 sm:$0xff]  ;;  %s1945_s5 = scalar_lea.vmem [#allocation16], %s1189_s1  ;;  %v1713_v55 = vmov (%p485_p3), 0.0   ;;  %vm495_vm13 = vcmask (%p485_p3), 253952  }
  0x44   : > { %491 = vst.msk [vmem:[#allocation2] sm:$0xff] (%p485_p3), %vm414_vm0, %v1713_v55 }
  0x45   : > { %v415_v3 = vsel %vm414_vm0, %v412_v1, 0.0  ;;  %v418_v5 = vsel %vm414_vm0, %v413_v4, 0.0  ;;  %492 = vst.msk [vmem:[#allocation2 + $0x8] sm:$0xff] (%p485_p3), %vm414_vm0, %v1713_v55 }
  0x46   : > { %416 = vadd.xlane.f32.xlu0 %v415_v3  ;;  %493 = vst.msk [vmem:[#allocation2 + $0x10] sm:$0xff] (%p485_p3), %vm414_vm0, %v1713_v55 }
  0x47   : > { %494 = vst.msk [vmem:[#allocation2 + $0x18] sm:$0xff] (%p485_p3), %vm414_vm0, %v1713_v55 }
  0x48   : > { %496 = vst.msk [vmem:[#allocation3] sm:$0x1] (%p485_p3), %vm495_vm13, %v1713_v55 }
  0x49   : > { %497 = vst.msk [vmem:[#allocation4] sm:$0x1] (%p485_p3), %vm495_vm13, %v1713_v55 }
  0x4e   : > { %419 = vadd.xlane.f32.xlu0 %v418_v5 }
  0xb9   : > { %v417_v6 = vpop.xlane.xlu0 %416 }
  0xba   : > { %1374 = vrsqrt.f32 %v417_v6  ;;  %vm428_vm1 = vcmp.eq.f32.partialorder %v417_v6, inf  ;;  %v431_v18 = vand.u32 2147483648, %v417_v6  ;;  %vm430_vm2 = vcmp.eq.f32.partialorder %v417_v6, 0.0 }
  0xc0   : > { %v1375_v7 = vpop.eup %1374 }
  0xc1   : > { %v422_v8 = vmul.f32 %v1375_v7, %v417_v6  ;;  %v420_v9 = vpop.xlane.xlu0 %419 }
  0xc2   : > { %1376 = vrsqrt.f32 %v420_v9  ;;  %vm440_vm3 = vcmp.eq.f32.partialorder %v420_v9, inf  ;;  %v443_v26 = vand.u32 2147483648, %v420_v9  ;;  %vm442_vm4 = vcmp.eq.f32.partialorder %v420_v9, 0.0 }
  0xc3   : > { %v423_v10 = vmul.f32 %v1375_v7, %v422_v8 }
  0xc5   : > { %v424_v11 = vmul.f32 0.5, %v423_v10 }
  0xc7   : > { %v425_v12 = vsub.f32 1.5, %v424_v11 }
  0xc8   : > { %v1377_v13 = vpop.eup %1376 }
  0xc9   : > { %v426_v14 = vmul.f32 %v1375_v7, %v425_v12  ;;  %v434_v15 = vmul.f32 %v1377_v13, %v420_v9 }
  0xcb   : > { %v427_v16 = vmul.f32 %v426_v14, %v417_v6  ;;  %v435_v17 = vmul.f32 %v1377_v13, %v434_v15 }
  0xcd   : > { %v429_v19 = vsel %vm428_vm1, %v417_v6, %v427_v16  ;;  %v436_v20 = vmul.f32 0.5, %v435_v17 }
  0xce   : > { %v432_v21 = vsel %vm430_vm2, %v431_v18, %v429_v19 }
  0xcf   : > { %v445_v22 = vmax.f32 %v432_v21, 1e-12  ;;  %v437_v23 = vsub.f32 1.5, %v436_v20 }
  0xd1   : > { %1378 = vrcp.f32 %v445_v22  ;;  %v438_v24 = vmul.f32 %v1377_v13, %v437_v23  ;;  %v458_v33 = vand.u32 2147483648, %v445_v22  ;;  %v456_v35 = vand.u32 2147483647, %v445_v22 }
  0xd2   : > { %vm452_vm6 = vweird.f32 %v445_v22 }
  0xd3   : > { %v439_v25 = vmul.f32 %v438_v24, %v420_v9  ;;  %v459_v37 = vor.u32 1.1754944e-38, %v458_v33  ;;  %vm457_vm8 = vcmp.eq.f32.partialorder %v456_v35, 8.507059e+37 }
  0xd5   : > { %v441_v27 = vsel %vm440_vm3, %v420_v9, %v439_v25 }
  0xd6   : > { %v444_v29 = vsel %vm442_vm4, %v443_v26, %v441_v27 }
  0xd7   : > { %v1379_v28 = vpop.eup %1378  ;;  %v446_v31 = vmax.f32 %v444_v29, 1e-12 }
  0xd8   : > { %v448_v30 = vmul.f32 %v1379_v28, %v445_v22  ;;  %vm453_vm5 = vweird.f32 %v1379_v28 }
  0xd9   : > { %1380 = vrcp.f32 %v446_v31  ;;  %vm454_vm7 = vmor %vm452_vm6, %vm453_vm5  ;;  %v473_v46 = vand.u32 2147483648, %v446_v31  ;;  %v471_v48 = vand.u32 2147483647, %v446_v31  ;;  %vm467_vm10 = vweird.f32 %v446_v31 }
  0xda   : > { %v449_v32 = vsub.f32 1.0, %v448_v30 }
  0xdb   : > { %v474_v50 = vor.u32 1.1754944e-38, %v473_v46  ;;  %vm472_vm12 = vcmp.eq.f32.partialorder %v471_v48, 8.507059e+37 }
  0xdc   : > { %v450_v34 = vmul.f32 %v1379_v28, %v449_v32 }
  0xde   : > { %v451_v36 = vadd.f32 %v1379_v28, %v450_v34 }
  0xdf   : > { %v1381_v38 = vpop.eup %1380 }
  0xe0   : > { %v455_v40 = vsel %vm454_vm7, %v1379_v28, %v451_v36  ;;  %v463_v42 = vmul.f32 %v1381_v38, %v446_v31  ;;  %vm468_vm9 = vweird.f32 %v1381_v38 }
  0xe1   : > { %v460_v41 = vsel %vm457_vm8, %v459_v37, %v455_v40  ;;  %vm469_vm11 = vmor %vm467_vm10, %vm468_vm9 }
  0xe2   : > { %v477_v43 = vmul.f32 %v460_v41, %v410_v0  ;;  %v464_v44 = vsub.f32 1.0, %v463_v42 }
  0xe4   : > { %v1938_v45 = vmul.f32 %v1373_v39, %v477_v43  ;;  %v465_v47 = vmul.f32 %v1381_v38, %v464_v44 }
  0xe6   : > { %v466_v49 = vadd.f32 %v1381_v38, %v465_v47 }
  0xe8   : > { %v470_v51 = vsel %vm469_vm11, %v1381_v38, %v466_v49  ;;  %490 = sbr.rel (!%p485_p3) target bundleno = 237 (0xed), region = 76 }
  0xe9   : > { %v475_v52 = vsel %vm472_vm12, %v474_v50, %v470_v51 }
  0xea   : > { %v478_v53 = vmul.f32 %v475_v52, %v1931_v2 }
  0xec   : > { %v1941_v54 = vmul.f32 %v1373_v39, %v478_v53 }
  0xed PF: > { %p1197_p1 = scmp.ne.s32.totalorder %s1688_s27, 0 }
  0xee   : > { %s1714_s6 = smov (!%p1197_p1), 96  }
  0xef   : > { %500 = sbr.rel (%p1197_p1) target bundleno = 744 (0x2e8), region = 80 }
  0xf4   : > { %v504_v56 = vld [vmem:[#allocation10 + $0x18] sm:$0xff]  ;;  %v503_v57 = vld [vmem:[#allocation10 + $0x10] sm:$0xff]  ;;  %v502_v58 = vld [vmem:[#allocation10 + $0x8] sm:$0xff]  ;;  %vm550_vm14 = vcmask 523520   ;;  %vm547_vm15 = vcmask 253952   ;;  %vm610_vm1 = vcmask 130048  }
  0xf5   : > { %1225 = vmatpush.msra.mxu3 %v504_v56  ;;  %523 = vmatpush.msra.mxu0 %v504_v56  ;;  %v501_v59 = vld [vmem:[#allocation10] sm:$0xff]  ;;  %v534_v17 = vld [vmem:[#allocation3] sm:$0x1]  ;;  %v549_v24 = vld [vmem:[#allocation4] sm:$0x1] }
  0xf6   : > { %v566_v31 = vld [vmem:[#allocation2] sm:$0xff]  ;;  %v567_v34 = vld [vmem:[#allocation2 + $0x8] sm:$0xff]  ;;  %v568_v37 = vld [vmem:[#allocation2 + $0x10] sm:$0xff] }
  0xf7   : > { %1226 = vmatpush.msra.mxu3 %v503_v57  ;;  %524 = vmatpush.msra.mxu0 %v503_v57  ;;  %v569_v40 = vld [vmem:[#allocation2 + $0x18] sm:$0xff] }
  0xf9   : > { %1227 = vmatpush.msra.mxu3 %v502_v58  ;;  %525 = vmatpush.msra.mxu0 %v502_v58 }
  0xfb   : > { %1228 = vmatpush.msra.mxu3 %v501_v59  ;;  %526 = vmatpush.msra.mxu0 %v501_v59 }
  0xfc   : > { %1199 = vmatmul.msk.f32.vlgmr.msra.gmra.mxu3 %vm414_vm0, %v1941_v54  ;;  %1198 = vmatmul.msk.f32.vlgmr.msra.gmra.mxu0 %vm414_vm0, %v1938_v45 }
 0x179   : > { %v528_v60 = vpop.f32.mrf.mxu0 }
 0x17a   : > { %v535_v61 = vmul.f32 %v528_v60, %v528_v60 }
 0x17c   : > { %v537_v63 = vsel %vm414_vm0, %v535_v61, 0.0  ;;  %v551_v0 = vsel %vm550_vm14, %v535_v61, 0.0 }
 0x17f   : > { %v531_v62 = vpop.f32.mrf.mxu3 }
 0x180   : > { %v536_v1 = vmul.f32 %v531_v62, %v531_v62  ;;  %v1382_v2 = vpack.i.bf16 %v528_v60, %v531_v62 }
 0x182   : > { %v538_v3 = vsel %vm414_vm0, %v536_v1, 0.0  ;;  %v552_v4 = vsel %vm550_vm14, %v536_v1, 0.0  ;;  %1383 = vrot.lane.b32.xlu0 %v1382_v2, %s1714_s6 }
 0x183   : > { %v539_v5 = vadd.f32 %v538_v3, %v537_v63  ;;  %v553_v6 = vadd.f32 %v552_v4, %v551_v0 }
 0x185   : > { %v540_v7 = vrot.slane %v539_v5, 4  ;;  %v554_v8 = vrot.slane %v553_v6, 4 }
 0x187   : > { %v541_v9 = vadd.f32 %v540_v7, %v539_v5  ;;  %v555_v10 = vadd.f32 %v554_v8, %v553_v6 }
 0x189   : > { %v542_v11 = vrot.slane %v541_v9, 2  ;;  %v556_v12 = vrot.slane %v555_v10, 2 }
 0x18b   : > { %v543_v13 = vadd.f32 %v542_v11, %v541_v9  ;;  %v557_v14 = vadd.f32 %v556_v12, %v555_v10 }
 0x18d   : > { %v544_v15 = vrot.slane %v543_v13, 1  ;;  %v558_v16 = vrot.slane %v557_v14, 1 }
 0x18f   : > { %v545_v18 = vadd.f32 %v544_v15, %v543_v13  ;;  %v559_v19 = vadd.f32 %v558_v16, %v557_v14 }
 0x191   : > { %561 = vrot.lane.b32.xlu1 %v559_v19, %s1714_s6  ;;  %v546_v20 = vadd.f32 %v545_v18, %v534_v17 }
 0x193   : > { %548 = vst.msk [vmem:[#allocation3] sm:$0x1] %vm547_vm15, %v546_v20 }
 0x1a4   : > { %570 = vxpose.xlu0.b32.start [1/2] (short) (narrow) %v528_v60, 32 }
 0x1ac   : > { %571 = vxpose.xlu0.b32.end [2/2] (short) (narrow) %v531_v62, 32 }
 0x1f4   : > { %v1384_v21 = vpop.permute.xlu0 %1383 }
 0x1f5   : > { %v1385_v22 = vunpack.i.l.bf16 %v1384_v21  ;;  %v1386_v23 = vunpack.i.h.bf16 %v1384_v21 }
 0x1f7   : > { %637 = vmatpush.msra.mxu1 %v1385_v22  ;;  %1229 = vmatpush.msra.mxu2 %v1385_v22 }
 0x1f9   : > { %638 = vmatpush.msra.mxu1 %v1386_v23  ;;  %1230 = vmatpush.msra.mxu2 %v1386_v23 }
 0x203   : > { %v562_v25 = vpop.permute.xlu1 %561 }
 0x204   : > { %v564_v26 = vadd.f32 %v562_v25, %v549_v24 }
 0x206   : > { %565 = vst.msk [vmem:[#allocation4] sm:$0x1] %vm547_vm15, %v564_v26 }
 0x248   : > { %v586_v27 = vpop.trf.xlu0 }
 0x249   : > { %1200 = vmatmul.msk.f32.vlgmr.msra.gmra.mxu1 %vm610_vm1, %v586_v27 }
 0x250   : > { %v587_v28 = vpop.trf.xlu0 }
 0x251   : > { %1201 = vmatmul.msk.f32.gmra.mxu1 %vm610_vm1, %v587_v28 }
 0x258   : > { %v588_v29 = vpop.trf.xlu0 }
 0x259   : > { %1202 = vmatmul.msk.f32.vlgmr.msra.gmra.mxu2 %vm610_vm1, %v588_v29 }
 0x260   : > { %v589_v30 = vpop.trf.xlu0 }
 0x261   : > { %1203 = vmatmul.msk.f32.gmra.mxu2 %vm610_vm1, %v589_v30 }
 0x2c6   : > { %v640_v32 = vpop.f32.mrf.mxu1 }
 0x2c7   : > { %v652_v33 = vadd.f32 %v640_v32, %v566_v31 }
 0x2c9   : > { %656 = vst.msk [vmem:[#allocation2] sm:$0xff] %vm414_vm0, %v652_v33 }
 0x2ce   : > { %v643_v35 = vpop.f32.mrf.mxu1 }
 0x2cf   : > { %v653_v36 = vadd.f32 %v643_v35, %v567_v34 }
 0x2d1   : > { %657 = vst.msk [vmem:[#allocation2 + $0x8] sm:$0xff] %vm414_vm0, %v653_v36 }
 0x2dc   : > { %v646_v38 = vpop.f32.mrf.mxu2 }
 0x2dd   : > { %v654_v39 = vadd.f32 %v646_v38, %v568_v37 }
 0x2df   : > { %658 = vst.msk [vmem:[#allocation2 + $0x10] sm:$0xff] %vm414_vm0, %v654_v39 }
 0x2e4   : > { %v649_v41 = vpop.f32.mrf.mxu2 }
 0x2e5   : > { %v655_v42 = vadd.f32 %v649_v41, %v569_v40 }
 0x2e7   : > { %659 = vst.msk [vmem:[#allocation2 + $0x18] sm:$0xff] %vm414_vm0, %v655_v42 }
 0x2e8 PF: > { %p660_p8 = scmp.eq.s32.totalorder %s1688_s27, 1 }
 0x2e9   : > { %v665_v43 = vld [vmem:[#allocation3] sm:$0x1] (%p660_p8)  ;;  %v1715_v49 = vmov (%p660_p8), 0   ;;  %v694_v10 = vld [vmem:[#allocation4] sm:$0x1] (%p660_p8)  ;;  %v792_v36 = vld [vmem:[#allocation13] sm:$0xff] (%p660_p8) }
 0x2ea   : > { %664 = sbr.rel (!%p660_p8) target bundleno = 1363 (0x553), region = 84  ;;  %1390 = vrsqrt.f32 (%p660_p8), %v665_v43  ;;  %1388 = vset.pattern.permute.xlu1 (%p660_p8), %v1715_v49  ;;  %1389 = vset.pattern.permute.xlu2 (%p660_p8), %v1715_v49  ;;  %vm673_vm2 = vcmp.eq.f32.partialorder (%p660_p8), %v665_v43, inf  ;;  %v676_v52 = vand.u32 (%p660_p8), 2147483648, %v665_v43  ;;  %vm675_vm3 = vcmp.eq.f32.partialorder (%p660_p8), %v665_v43, 0.0  ;;  %v723_v2 = vld [vmem:[%s2059_s4] sm:$0x1] (%p660_p8) }
 0x2eb   : > { %vm702_vm8 = vcmp.eq.f32.partialorder (%p660_p8), %v694_v10, inf  ;;  %v705_v18 = vand.u32 (%p660_p8), 2147483648, %v694_v10  ;;  %vm704_vm9 = vcmp.eq.f32.partialorder (%p660_p8), %v694_v10, 0.0  ;;  %v757_v32 = vld [vmem:[#allocation2] sm:$0xff] (%p660_p8)  ;;  %v758_v39 = vld [vmem:[#allocation2 + $0x8] sm:$0xff] (%p660_p8) }
 0x2f0   : > { %v1391_v44 = vpop.eup %1390 }
 0x2f1   : > { %v667_v46 = vmul.f32 %v1391_v44, %v665_v43 }
 0x2f3   : > { %v668_v47 = vmul.f32 %v1391_v44, %v667_v46 }
 0x2f5   : > { %v669_v48 = vmul.f32 0.5, %v668_v47  ;;  %v759_v47 = vld [vmem:[#allocation2 + $0x10] sm:$0xff] }
 0x2f7   : > { %v670_v50 = vsub.f32 1.5, %v669_v48  ;;  %v760_v48 = vld [vmem:[#allocation2 + $0x18] sm:$0xff] }
 0x2f9   : > { %v671_v51 = vmul.f32 %v1391_v44, %v670_v50 }
 0x2fb   : > { %v672_v53 = vmul.f32 %v671_v51, %v665_v43 }
 0x2fd   : > { %v674_v55 = vsel %vm673_vm2, %v665_v43, %v672_v53  ;;  %v793_v43 = vld [vmem:[#allocation13 + $0x8] sm:$0xff] }
 0x2fe   : > { %v677_v56 = vsel %vm675_vm3, %v676_v52, %v674_v55  ;;  %v794_v55 = vld [vmem:[#allocation13 + $0x10] sm:$0xff] }
 0x2ff   : > { %v678_v57 = vmax.f32 %v677_v56, 1e-12 }
 0x301   : > { %1392 = vrcp.f32 %v678_v57  ;;  %v690_v60 = vand.u32 2147483648, %v678_v57  ;;  %vm684_vm4 = vweird.f32 %v678_v57  ;;  %v688_v62 = vand.u32 2147483647, %v678_v57 }
 0x302   : > { %1394 = vrsqrt.f32 %v694_v10 }
 0x303   : > { %v691_v0 = vor.u32 1.1754944e-38, %v690_v60  ;;  %vm689_vm7 = vcmp.eq.f32.partialorder %v688_v62, 8.507059e+37 }
 0x307   : > { %v1393_v58 = vpop.eup %1392 }
 0x308   : > { %v680_v59 = vmul.f32 %v1393_v58, %v678_v57  ;;  %vm685_vm5 = vweird.f32 %v1393_v58  ;;  %v1395_v11 = vpop.eup %1394 }
 0x309   : > { %vm686_vm6 = vmor %vm684_vm4, %vm685_vm5  ;;  %v696_v12 = vmul.f32 %v1395_v11, %v694_v10 }
 0x30a   : > { %v681_v61 = vsub.f32 1.0, %v680_v59  ;;  %v795_v59 = vld [vmem:[#allocation13 + $0x18] sm:$0xff] }
 0x30b   : > { %v697_v13 = vmul.f32 %v1395_v11, %v696_v12 }
 0x30c   : > { %v682_v63 = vmul.f32 %v1393_v58, %v681_v61 }
 0x30d   : > { %v698_v14 = vmul.f32 0.5, %v697_v13 }
 0x30e   : > { %v683_v1 = vadd.f32 %v1393_v58, %v682_v63 }
 0x30f   : > { %v699_v15 = vsub.f32 1.5, %v698_v14 }
 0x310   : > { %v687_v3 = vsel %vm686_vm6, %v1393_v58, %v683_v1 }
 0x311   : > { %v692_v4 = vsel %vm689_vm7, %v691_v0, %v687_v3  ;;  %v700_v16 = vmul.f32 %v1395_v11, %v699_v15 }
 0x312   : > { %v724_v5 = vmul.f32 %v723_v2, %v692_v4 }
 0x313   : > { %v701_v17 = vmul.f32 %v700_v16, %v694_v10 }
 0x314   : > { %725 = vxpose.xlu0.b32.start.end [1/1] (short) (narrow) %v724_v5, 32 }
 0x315   : > { %v703_v19 = vsel %vm702_vm8, %v694_v10, %v701_v17 }
 0x316   : > { %v706_v20 = vsel %vm704_vm9, %v705_v18, %v703_v19 }
 0x317   : > { %v707_v21 = vmax.f32 %v706_v20, 1e-12 }
 0x319   : > { %1396 = vrcp.f32 %v707_v21  ;;  %vm713_vm10 = vweird.f32 %v707_v21  ;;  %v719_v26 = vand.u32 2147483648, %v707_v21  ;;  %v717_v28 = vand.u32 2147483647, %v707_v21 }
 0x31b   : > { %v720_v29 = vor.u32 1.1754944e-38, %v719_v26  ;;  %vm718_vm13 = vcmp.eq.f32.partialorder %v717_v28, 8.507059e+37 }
 0x31f   : > { %v1397_v22 = vpop.eup %1396 }
 0x320   : > { %v709_v23 = vmul.f32 %v1397_v22, %v707_v21  ;;  %vm714_vm11 = vweird.f32 %v1397_v22 }
 0x321   : > { %vm715_vm12 = vmor %vm713_vm10, %vm714_vm11 }
 0x322   : > { %v710_v24 = vsub.f32 1.0, %v709_v23 }
 0x324   : > { %v711_v25 = vmul.f32 %v1397_v22, %v710_v24 }
 0x326   : > { %v712_v27 = vadd.f32 %v1397_v22, %v711_v25 }
 0x328   : > { %v716_v30 = vsel %vm715_vm12, %v1397_v22, %v712_v27 }
 0x329   : > { %v721_v31 = vsel %vm718_vm13, %v720_v29, %v716_v30 }
 0x32a   : > { %v786_v33 = vperm.slane %v721_v31, 0 }
 0x37b   : > { %1387 = vset.pattern.permute.xlu0 %v1715_v49 }
 0x3b8   : > { %v741_v6 = vpop.trf.xlu0 }
 0x3b9   : > { %763 = vperm.xlu0 %1387, %v741_v6  }
 0x3c0   : > { %v742_v7 = vpop.trf.xlu0 }
 0x3c1   : > { %768 = vperm.xlu1 %1388, %v742_v7  }
 0x3c8   : > { %v743_v8 = vpop.trf.xlu0 }
 0x3c9   : > { %773 = vperm.xlu1 %1388, %v743_v8  }
 0x3d0   : > { %v744_v9 = vpop.trf.xlu0 }
 0x3d1   : > { %778 = vperm.xlu2 %1389, %v744_v9  }
 0x42b   : > { %v764_v34 = vpop.permute.xlu0 %763  ;;  %v779_v49 = vpop.permute.xlu2 %778 }
 0x42c   : > { %v781_v35 = vmul.f32 %v764_v34, %v757_v32  ;;  %v784_v53 = vmul.f32 %v779_v49, %v760_v48 }
 0x42e   : > { %v788_v37 = vmul.f32 %v786_v33, %v781_v35  ;;  %v791_v57 = vmul.f32 %v786_v33, %v784_v53 }
 0x430   : > { %v796_v38 = vadd.f32 %v792_v36, %v788_v37  ;;  %v799_v61 = vadd.f32 %v795_v59, %v791_v57 }
 0x432   : > { %v800_v40 = vsel %vm414_vm0, %v796_v38, -inf  ;;  %v809_v62 = vsel %vm414_vm0, %v799_v61, -inf }
 0x433   : > { %v769_v41 = vpop.permute.xlu1 %768  ;;  %801 = vmax.xlane.f32.xlu2 %v800_v40 }
 0x434   : > { %v782_v42 = vmul.f32 %v769_v41, %v758_v39 }
 0x436   : > { %v789_v44 = vmul.f32 %v786_v33, %v782_v42 }
 0x438   : > { %v797_v46 = vadd.f32 %v793_v43, %v789_v44 }
 0x43a   : > { %v803_v50 = vsel %vm414_vm0, %v797_v46, -inf }
 0x43b   : > { %804 = vmax.xlane.f32.xlu1 %v803_v50  ;;  %v774_v51 = vpop.permute.xlu1 %773 }
 0x43c   : > { %v783_v52 = vmul.f32 %v774_v51, %v759_v47 }
 0x43e   : > { %v790_v56 = vmul.f32 %v786_v33, %v783_v52 }
 0x440   : > { %v798_v58 = vadd.f32 %v794_v55, %v790_v56 }
 0x442   : > { %v806_v60 = vsel %vm414_vm0, %v798_v58, -inf }
 0x443   : > { %807 = vmax.xlane.f32.xlu2 %v806_v60 }
 0x44b   : > { %810 = vmax.xlane.f32.xlu2 %v809_v62 }
 0x4a6   : > { %v802_v63 = vpop.xlane.xlu2 %801 }
 0x4a7   : > { %v812_v0 = vsub.f32 %v796_v38, %v802_v63 }
 0x4a9   : > { %v816_v1 = vmul.f32 1.442695, %v812_v0 }
 0x4ab   : > { %1398 = vpow2.f32 %v816_v1 }
 0x4ae   : > { %v805_v2 = vpop.xlane.xlu1 %804 }
 0x4af   : > { %v813_v3 = vsub.f32 %v797_v46, %v805_v2 }
 0x4b1   : > { %v1399_v4 = vpop.eup %1398  ;;  %v818_v5 = vmul.f32 1.442695, %v813_v3 }
 0x4b2   : > { %v824_v6 = vsel %vm414_vm0, %v1399_v4, 0.0 }
 0x4b3   : > { %1400 = vpow2.f32 %v818_v5  ;;  %825 = vadd.xlane.f32.xlu1 %v824_v6 }
 0x4b6   : > { %v808_v7 = vpop.xlane.xlu2 %807 }
 0x4b7   : > { %v814_v8 = vsub.f32 %v798_v58, %v808_v7 }
 0x4b9   : > { %v1401_v9 = vpop.eup %1400  ;;  %v820_v10 = vmul.f32 1.442695, %v814_v8 }
 0x4ba   : > { %v827_v11 = vsel %vm414_vm0, %v1401_v9, 0.0 }
 0x4bb   : > { %1402 = vpow2.f32 %v820_v10  ;;  %828 = vadd.xlane.f32.xlu2 %v827_v11 }
 0x4be   : > { %v811_v12 = vpop.xlane.xlu2 %810 }
 0x4bf   : > { %v815_v13 = vsub.f32 %v799_v61, %v811_v12 }
 0x4c1   : > { %v1976_v14 = vpop.eup %1402  ;;  %v822_v15 = vmul.f32 1.442695, %v815_v13 }
 0x4c2   : > { %v830_v16 = vsel %vm414_vm0, %v1976_v14, 0.0 }
 0x4c3   : > { %1404 = vpow2.f32 %v822_v15  ;;  %831 = vadd.xlane.f32.xlu1 %v830_v16 }
 0x4c9   : > { %v1980_v17 = vpop.eup %1404 }
 0x4ca   : > { %v833_v18 = vsel %vm414_vm0, %v1980_v17, 0.0 }
 0x4cb   : > { %834 = vadd.xlane.f32.xlu2 %v833_v18 }
 0x526   : > { %v826_v19 = vpop.xlane.xlu1 %825 }
 0x527   : > { %1406 = vrcp.f32 %v826_v19  ;;  %v847_v24 = vand.u32 2147483648, %v826_v19  ;;  %v845_v26 = vand.u32 2147483647, %v826_v19  ;;  %vm841_vm15 = vweird.f32 %v826_v19 }
 0x529   : > { %v848_v29 = vor.u32 1.1754944e-38, %v847_v24  ;;  %vm846_vm2 = vcmp.eq.f32.partialorder %v845_v26, 8.507059e+37 }
 0x52d   : > { %v1407_v20 = vpop.eup %1406 }
 0x52e   : > { %v837_v21 = vmul.f32 %v1407_v20, %v826_v19  ;;  %v829_v22 = vpop.xlane.xlu2 %828  ;;  %vm842_vm14 = vweird.f32 %v1407_v20 }
 0x52f   : > { %1408 = vrcp.f32 %v829_v22  ;;  %vm843_vm1 = vmor %vm841_vm15, %vm842_vm14  ;;  %v862_v36 = vand.u32 2147483648, %v829_v22  ;;  %v860_v38 = vand.u32 2147483647, %v829_v22  ;;  %vm856_vm4 = vweird.f32 %v829_v22 }
 0x530   : > { %v838_v23 = vsub.f32 1.0, %v837_v21 }
 0x531   : > { %v863_v41 = vor.u32 1.1754944e-38, %v862_v36  ;;  %vm861_vm6 = vcmp.eq.f32.partialorder %v860_v38, 8.507059e+37 }
 0x532   : > { %v839_v25 = vmul.f32 %v1407_v20, %v838_v23 }
 0x534   : > { %v840_v27 = vadd.f32 %v1407_v20, %v839_v25 }
 0x535   : > { %v1409_v28 = vpop.eup %1408 }
 0x536   : > { %v844_v30 = vsel %vm843_vm1, %v1407_v20, %v840_v27  ;;  %v852_v31 = vmul.f32 %v1409_v28, %v829_v22  ;;  %v832_v32 = vpop.xlane.xlu1 %831  ;;  %vm857_vm3 = vweird.f32 %v1409_v28 }
 0x537   : > { %v849_v33 = vsel %vm846_vm2, %v848_v29, %v844_v30  ;;  %1410 = vrcp.f32 %v832_v32  ;;  %vm858_vm5 = vmor %vm856_vm4, %vm857_vm3  ;;  %v877_v49 = vand.u32 2147483648, %v832_v32  ;;  %v875_v51 = vand.u32 2147483647, %v832_v32 }
 0x538   : > { %v850_v34 = vmul.f32 %v1399_v4, %v849_v33  ;;  %v853_v35 = vsub.f32 1.0, %v852_v31  ;;  %vm871_vm8 = vweird.f32 %v832_v32 }
 0x539   : > { %v878_v55 = vor.u32 1.1754944e-38, %v877_v49  ;;  %vm876_vm10 = vcmp.eq.f32.partialorder %v875_v51, 8.507059e+37 }
 0x53a   : > { %896 = vst.msk [vmem:[#allocation2] sm:$0xff] %vm414_vm0, %v850_v34  ;;  %v854_v37 = vmul.f32 %v1409_v28, %v853_v35 }
 0x53c   : > { %v855_v39 = vadd.f32 %v1409_v28, %v854_v37 }
 0x53d   : > { %v1411_v40 = vpop.eup %1410 }
 0x53e   : > { %v859_v42 = vsel %vm858_vm5, %v1409_v28, %v855_v39  ;;  %v867_v43 = vmul.f32 %v1411_v40, %v832_v32  ;;  %v835_v44 = vpop.xlane.xlu2 %834  ;;  %vm872_vm7 = vweird.f32 %v1411_v40 }
 0x53f   : > { %v864_v46 = vsel %vm861_vm6, %v863_v41, %v859_v42  ;;  %1412 = vrcp.f32 %v835_v44  ;;  %vm873_vm9 = vmor %vm871_vm8, %vm872_vm7  ;;  %v892_v61 = vand.u32 2147483648, %v835_v44  ;;  %v890_v63 = vand.u32 2147483647, %v835_v44 }
 0x540   : > { %v865_v47 = vmul.f32 %v1401_v9, %v864_v46  ;;  %v868_v48 = vsub.f32 1.0, %v867_v43  ;;  %vm886_vm12 = vweird.f32 %v835_v44 }
 0x541   : > { %v893_v1 = vor.u32 1.1754944e-38, %v892_v61  ;;  %vm891_vm14 = vcmp.eq.f32.partialorder %v890_v63, 8.507059e+37 }
 0x542   : > { %897 = vst.msk [vmem:[#allocation2 + $0x8] sm:$0xff] %vm414_vm0, %v865_v47  ;;  %v869_v50 = vmul.f32 %v1411_v40, %v868_v48 }
 0x544   : > { %v870_v52 = vadd.f32 %v1411_v40, %v869_v50 }
 0x545   : > { %v1413_v53 = vpop.eup %1412 }
 0x546   : > { %v874_v56 = vsel %vm873_vm9, %v1411_v40, %v870_v52  ;;  %v882_v57 = vmul.f32 %v1413_v53, %v835_v44  ;;  %vm887_vm11 = vweird.f32 %v1413_v53 }
 0x547   : > { %v879_v58 = vsel %vm876_vm10, %v878_v55, %v874_v56  ;;  %vm888_vm13 = vmor %vm886_vm12, %vm887_vm11 }
 0x548   : > { %v880_v59 = vmul.f32 %v1976_v14, %v879_v58  ;;  %v883_v60 = vsub.f32 1.0, %v882_v57 }
 0x54a   : > { %898 = vst.msk [vmem:[#allocation2 + $0x10] sm:$0xff] %vm414_vm0, %v880_v59  ;;  %v884_v62 = vmul.f32 %v1413_v53, %v883_v60 }
 0x54c   : > { %v885_v0 = vadd.f32 %v1413_v53, %v884_v62 }
 0x54e   : > { %v889_v2 = vsel %vm888_vm13, %v1413_v53, %v885_v0 }
 0x54f   : > { %v894_v3 = vsel %vm891_vm14, %v893_v1, %v889_v2 }
 0x550   : > { %v895_v4 = vmul.f32 %v1980_v17, %v894_v3 }
 0x552   : > { %899 = vst.msk [vmem:[#allocation2 + $0x18] sm:$0xff] %vm414_vm0, %v895_v4 }
 0x553 PF: > { %p1205_p9 = scmp.ne.s32.totalorder %s1688_s27, 1 }
 0x555   : > { %902 = sbr.rel (%p1205_p9) target bundleno = 1777 (0x6f1), region = 88 }
 0x55a   : > { %v906_v5 = vld [vmem:[#allocation11 + $0x18] sm:$0xff]  ;;  %v905_v6 = vld [vmem:[#allocation11 + $0x10] sm:$0xff]  ;;  %v904_v8 = vld [vmem:[#allocation11 + $0x8] sm:$0xff] }
 0x55b   : > { %925 = vmatpush.msra.mxu0 %v906_v5  ;;  %v939_v7 = vld [vmem:[#allocation2 + $0x18] sm:$0xff]  ;;  %v938_v9 = vld [vmem:[#allocation2 + $0x10] sm:$0xff]  ;;  %v903_v10 = vld [vmem:[#allocation11] sm:$0xff] }
 0x55c   : > { %1208 = vmatpush.xpose.msk.msra.mxu1 %vm414_vm0, %v939_v7  ;;  %1231 = vmatpush.xpose.msk.msra.mxu3 %vm414_vm0, %v939_v7  ;;  %v937_v11 = vld [vmem:[#allocation2 + $0x8] sm:$0xff]  ;;  %v936_v12 = vld [vmem:[#allocation2] sm:$0xff]  ;;  %v983_v14 = vld [vmem:[#allocation14 + $0x10] sm:$0xff] }
 0x55d   : > { %926 = vmatpush.msra.mxu0 %v905_v6  ;;  %v984_v13 = vld [vmem:[#allocation14 + $0x18] sm:$0xff]  ;;  %v982_v15 = vld [vmem:[#allocation14 + $0x8] sm:$0xff]  ;;  %v981_v17 = vld [vmem:[#allocation14] sm:$0xff] }
 0x55e   : > { %1003 = vmatpush.msra.mxu2 %v984_v13 }
 0x55f   : > { %927 = vmatpush.msra.mxu0 %v904_v8 }
 0x560   : > { %1209 = vmatpush.xpose.msk.msra.mxu1 %vm414_vm0, %v938_v9  ;;  %1232 = vmatpush.xpose.msk.msra.mxu3 %vm414_vm0, %v938_v9 }
 0x561   : > { %928 = vmatpush.msra.mxu0 %v903_v10  ;;  %1004 = vmatpush.msra.mxu2 %v983_v14 }
 0x562   : > { %1206 = vmatmul.msk.f32.vlgmr.msra.gmra.mxu0 %vm414_vm0, %v1938_v45 }
 0x563   : > { %1005 = vmatpush.msra.mxu2 %v982_v15 }
 0x564   : > { %1210 = vmatpush.xpose.msk.msra.mxu1 %vm414_vm0, %v937_v11  ;;  %1233 = vmatpush.xpose.msk.msra.mxu3 %vm414_vm0, %v937_v11 }
 0x565   : > { %1006 = vmatpush.msra.mxu2 %v981_v17 }
 0x568   : > { %1211 = vmatpush.xpose.msk.msra.mxu1 %vm414_vm0, %v936_v12  ;;  %1234 = vmatpush.xpose.msk.msra.mxu3 %vm414_vm0, %v936_v12 }
 0x56a   : > { %1207 = vmatmul.msk.f32.gmra.mxu0 %vm414_vm0, %v1941_v54 }
 0x5df   : > { %v930_v45 = vpop.f32.mrf.mxu0 }
 0x5e0   : > { %1212 = vmatmul.msk.f32.vlgmr.msra.gmra.mxu1 %vm414_vm0, %v930_v45 }
 0x5e7   : > { %v933_v16 = vpop.f32.mrf.mxu0 }
 0x5e8   : > { %1213 = vmatmul.msk.f32.vlgmr.msra.gmra.mxu3 %vm414_vm0, %v933_v16 }
 0x65d   : > { %v975_v18 = vpop.f32.mrf.mxu1 }
 0x65e   : > { %1214 = vmatmul.msk.f32.vlgmr.msra.gmra.mxu2 %vm414_vm0, %v975_v18 }
 0x66b   : > { %v978_v54 = vpop.f32.mrf.mxu3 }
 0x66c   : > { %1215 = vmatmul.msk.f32.gmra.mxu2 %vm414_vm0, %v978_v54 }
 0x6e1   : > { %v1008_v19 = vpop.f32.mrf.mxu2 }
 0x6e2   : > { %1014 = vst.msk [vmem:[%s1945_s5] sm:$0xff] %vm414_vm0, %v1008_v19 }
 0x6ef   : > { %v1011_v20 = vpop.f32.mrf.mxu2 }
 0x6f0   : > { %1015 = vst.msk [vmem:[%s1945_s5 + $0x8] sm:$0xff] %vm414_vm0, %v1011_v20 }
 0x6f1 PF: > { %s1224_s27 = sshll.u32 %s1692_s28, 4  ;;  %s1032_s20 = sshll.u32 %s1945_s5, 4  ;;  %s1033_s20 = int_to_ptr.vmem [resolvable:$true] %s1032_s20 }
 0x6f2   : > { %s1031_s21 = scalar_lea.hbm %s2062_s7, %s1224_s27  ;;  %s1017_s22 = scalar_lea.sflag [#allocation7], %s1909_s23 }
 0x6f3   : > { %s1034_s17 = sshll.u32 %s1031_s21, 4  ;;  %s1614_s28 = scalar_lea.hbm %s2062_s7, 32  ;;  %s1035_s17 = int_to_ptr.hbm [resolvable:$true] %s1034_s17 }
 0x6f4   : > { %s1608_s12 = sshra.s32 %s1035_s17, 4  ;;  %s1609_s12 = int_to_ptr.hbm [resolvable:$true] %s1608_s12 }
 0x6f5   : > { %s1610_s19 = scalar_lea.hbm %s1609_s12, 16  ;;  %p1615_p13 = scmp.lt.s32.totalorder %s1609_s12, %s2062_s7 }
 0x6f6   : > { %p1611_p10 = scmp.ne.s32.totalorder %s1609_s12, %s1610_s19  ;;  %p1616_p0 = scmp.lt.s32.totalorder %s1614_s28, %s1610_s19 }
 0x6f8   : > { %p1612_p11 = pnand %p1611_p10, %p1882_p2  ;;  %p1617_p5 = por %p1616_p0, %p1615_p13 }
 0x6fa   : > { %p1613_p12 = pneg %p1612_p11 }
 0x6fc   : > { %p1618_p6 = pnand %p1617_p5, %p1613_p12 }
 0x6fe   : > { %1621 = shalt.err (!%p1618_p6)
}
 0x6ff   : > { %s1716_s23 = smov 128   ;;  %s1717_s3 = smov 8  }
 0x700   : > { %1257 = dma.vmem_to_hbm [thread:$0]  (%p1882_p2), %s1033_s20, 256, %s1035_s17, %s1017_s22, %s1716_s23, %s1716_s23, %s1717_s3  }
 0x701 PF: > { %p1294_p7 = scmp.ge.s32.totalorder %s1704_s8, 2  ;;  %s1049_s5 = sand.u32 1, %s1676_s24  }
 0x702   : > { %s1050_s6 = scalar_lea.sflag [#allocation7], %s1049_s5 }
 0x703   : > { %p1280_p3 = pnand %p1294_p7, %p1886_p4 }
 0x705   : > { %p1281_p1 = pneg %p1280_p3 }
 0x707   : > { %1671 = dma.done.wait (%p1281_p1), %s1050_s6, 256  }
 0x708   : > { %1673 = vsyncadd (%p1281_p1), %s1050_s6, 4294967040  ;;  %s26_s8 = sadd.s32 1, %s1704_s8   ;;  %s2091_s27 = sld [smem:[#allocation22_spill]] }
 0x709   : > { %p23_p8 = scmp.ge.s32.totalorder %s26_s8, 6   ;;  %s2092_s29 = sld [smem:[#allocation23_spill]] }
 0x70a   : > { %s2093_s11 = sld [smem:[#allocation24_spill]]  ;;  %s2094_s24 = smov %s1680_s25 }
 0x70b   : > { %s2095_s25 = smov %s1684_s26  ;;  %s2096_s26 = smov %s1895_s15 }
 0x70c   : > { %s2097_s28 = smov %s1700_s30  ;;  %25 = sbr.rel (!%p23_p8) target bundleno = 16 (0x10), region = 129 }
 0x710   : > { %s2098_s30 = smov %s2093_s11 }
 0x711   :  { %1056 = vsyncpa [#allocation6], 1 }
 0x712   :  { %1058 = vsyncpa [#allocation6 + $0x1], 1 }
 0x713   :  { %1059 = vsyncpa [#allocation9], 1 }
 0x714   :  { %1060 = vsyncpa [#allocation12], 1 }
 0x715   :  { %1061 = vsyncpa [#allocation15], 1 }
 0x716   :  { %1062 = vsyncpa [#allocation7], 1 }
 0x717   :  { %1064 = vsyncpa [#allocation7 + $0x1], 1 }

</bundles_post_ra>
